<compile_context>
chip_gen: v5e
topology: v5e:2x2
jax: 0.10.0
libtpu: 0.0.40
codegen_flags: <defaults>
</compile_context>

<pallas_src>
from functools import partial

import jax
import jax.numpy as jnp
from jax.experimental import pallas as pl
from jax.experimental.pallas import tpu as pltpu


def _mha_kernel(num_heads, x_ref, wqkv_ref, bqkv_ref, wo_ref, bo_ref, o_ref):
    """Single grid step; every operand is a full VMEM-resident block.

    Shapes (t=seq, b=batch, nf=features, h=heads, hk=h*nf, P=padded out lanes):
      x_ref    : (t, b, nf)
      wqkv_ref : (nf, 3*hk)   columns = [q heads | k heads | v heads]
      bqkv_ref : (1, 3*hk)
      wo_ref   : (hk, P)      output Linear weight, zero-padded to P=128 lanes
      bo_ref   : (1, P)
      o_ref    : (t, b*P)     batch bi occupies lanes [bi*P, (bi+1)*P)
    """
    t, b, nf = x_ref.shape
    h = num_heads
    hk = h * nf

    x = x_ref[...]                                                    # (t, b, nf)

    # Fold batch into rows (b-major) so the QKV projection is ONE lane-dense
    # 2-D matmul: (b*t, nf) @ (nf, 3*hk).
    xf = jnp.concatenate([x[:, bi, :] for bi in range(b)], axis=0)    # (b*t, nf)
    qkv = jnp.dot(xf, wqkv_ref[...],
                  preferred_element_type=jnp.float32) + bqkv_ref[...]  # (b*t, 3hk)

    # Head/batch split with static sublane+lane slices -> (b*h, t, nf); group
    # index g = bi*h + hi matches the reference .view(t, b*h, k) ordering.
    def split(base):
        return jnp.concatenate(
            [qkv[bi * t:(bi + 1) * t, base + hi * nf:base + (hi + 1) * nf][None]
             for bi in range(b) for hi in range(h)], axis=0)
    q3 = split(0)                                                     # (b*h, t, nf)
    k3 = split(hk)
    v3 = split(2 * hk)

    # Scores; 1/sqrt(nf) applied once (== q and k each divided by nf**0.25).
    s = jnp.einsum("gtk,gsk->gts", q3, k3,
                   preferred_element_type=jnp.float32) * (float(nf) ** -0.5)
    s = s - jnp.max(s, axis=-1, keepdims=True)
    e = jnp.exp(s)
    p = e / jnp.sum(e, axis=-1, keepdims=True)       # exact divide (EUP has slack)

    attn = jnp.einsum("gts,gsk->gtk", p, v3,
                      preferred_element_type=jnp.float32)             # (b*h, t, nf)

    # Merge heads back to (b*t, hk) (rows b-major, lanes head-major) and apply
    # the output Linear as ONE 2-D contraction into 128 padded lanes.
    attn_f = jnp.concatenate(
        [jnp.concatenate([attn[bi * h + hi] for hi in range(h)], axis=1)
         for bi in range(b)], axis=0)                                 # (b*t, hk)
    out = jnp.dot(attn_f, wo_ref[...],
                  preferred_element_type=jnp.float32) + bo_ref[...]   # (b*t, P)

    # Lane-dense, unmasked store of the whole output slab.
    o_full = jnp.concatenate([out[bi * t:(bi + 1) * t, :] for bi in range(b)],
                             axis=1)                                  # (t, b*P)
    o_ref[...] = o_full.astype(o_ref.dtype)


_OUT_PAD = 128  # pad the 8-wide output projection to a full lane group


def pack_mha_params(params, *, num_heads, num_features):
    """One-time packing of the module's Linear weights (module-init cost)."""
    wq, bq, wk, bk, wv, bv, wo, bo = params
    hk = num_heads * num_features
    wqkv = jnp.concatenate([wq, wk, wv], axis=1)                 # (nf, 3*hk)
    bqkv = jnp.concatenate([bq, bk, bv]).reshape(1, 3 * hk)      # (1, 3*hk)
    h_out = wo.shape[1]
    wo_p = jnp.zeros((hk, _OUT_PAD), wo.dtype).at[:, :h_out].set(wo)
    bo_p = jnp.zeros((1, _OUT_PAD), bo.dtype).at[0, :h_out].set(bo)
    return wqkv, bqkv, wo_p, bo_p


@partial(jax.jit, static_argnames=("num_heads",))
def multi_headed_attention(x_tbk, wqkv, bqkv, wo_p, bo_p, *, num_heads):
    t, b, nf = x_tbk.shape
    h = num_heads
    pad = wo_p.shape[1]

    kernel = partial(_mha_kernel, h)
    out_pad = pl.pallas_call(
        kernel,
        out_shape=jax.ShapeDtypeStruct((t, b * pad), x_tbk.dtype),
        grid=(1,),                                   # single step: weights stay
        in_specs=[                                   # resident, no re-pipelining
            pl.BlockSpec((t, b, nf), lambda i: (0, 0, 0)),
            pl.BlockSpec(wqkv.shape, lambda i: (0, 0)),
            pl.BlockSpec(bqkv.shape, lambda i: (0, 0)),
            pl.BlockSpec(wo_p.shape, lambda i: (0, 0)),
            pl.BlockSpec(bo_p.shape, lambda i: (0, 0)),
        ],
        out_specs=pl.BlockSpec((t, b * pad), lambda i: (0, 0)),
        compiler_params=pltpu.CompilerParams(
            dimension_semantics=("arbitrary",),
            vmem_limit_bytes=32 * 1024 * 1024),
    )(x_tbk, wqkv, bqkv, wo_p, bo_p)

    # (t, b*128) -> (t, b, 128) -> keep the h real output lanes.
    return out_pad.reshape(t, b, pad)[..., :h]


def reference_forward(x_tbk, params, *, num_heads, num_features):
    """Pure-JAX reference (intended semantics of the PyTorch module)."""
    t, b, k = x_tbk.shape
    h = num_heads
    wq, bq, wk, bk, wv, bv, wo, bo = params
    xf = x_tbk.reshape(t * b, k)
    q = (xf @ wq + bq).reshape(t, b * h, k) / k ** 0.25
    kk = (xf @ wk + bk).reshape(t, b * h, k) / k ** 0.25
    v = (xf @ wv + bv).reshape(t, b * h, k)
    outs = []
    for i in range(b * h):
        s = q[:, i, :] @ kk[:, i, :].T
        p = jax.nn.softmax(s, axis=-1)
        outs.append(p @ v[:, i, :])
    attn = jnp.stack(outs, axis=1).reshape(t, b, h * k)
    return (attn.reshape(t * b, h * k) @ wo + bo).reshape(t, b, h)


if __name__ == "__main__":
    T, B, NUM_FEATURES, NUM_HEADS = 8, 2, 32, 8
    HK = NUM_HEADS * NUM_FEATURES

    key = jax.random.PRNGKey(0)
    keys = jax.random.split(key, 9)

    def init(kk, shape, scale=0.1):
        return scale * jax.random.normal(kk, shape, dtype=jnp.float32)

    params = (
        init(keys[0], (NUM_FEATURES, HK)), init(keys[1], (HK,)),          # to_queries
        init(keys[2], (NUM_FEATURES, HK)), init(keys[3], (HK,)),          # to_keys
        init(keys[4], (NUM_FEATURES, HK)), init(keys[5], (HK,)),          # to_values
        init(keys[6], (HK, NUM_HEADS)),    init(keys[7], (NUM_HEADS,)),   # output
    )
    x = jax.random.normal(keys[8], (T, B, NUM_FEATURES), dtype=jnp.float32)

    # One-time packing (module init), not part of the per-call path.
    packed = pack_mha_params(params, num_heads=NUM_HEADS,
                             num_features=NUM_FEATURES)

    out = multi_headed_attention(x, *packed, num_heads=NUM_HEADS)
    out = jax.block_until_ready(out)
    assert out.shape == (T, B, NUM_HEADS), out.shape

    ref = reference_forward(x, params,
                            num_heads=NUM_HEADS, num_features=NUM_FEATURES)
    max_err = float(jnp.max(jnp.abs(out - ref)))
    assert jnp.allclose(out, ref, atol=5e-3, rtol=5e-3), max_err

    print("KERNEL_OK")
</pallas_src>

<mosaic_0001>
module attributes {stable_mosaic.version = 11 : i64} {
  func.func @_mha_kernel(%arg0: i32, %arg1: memref<8x2x32xf32, #tpu.memory_space<vmem>>, %arg2: memref<32x768xf32, #tpu.memory_space<vmem>>, %arg3: memref<1x768xf32, #tpu.memory_space<vmem>>, %arg4: memref<256x128xf32, #tpu.memory_space<vmem>>, %arg5: memref<1x128xf32, #tpu.memory_space<vmem>>, %arg6: memref<8x256xf32, #tpu.memory_space<vmem>>) attributes {dimension_semantics = [#tpu.dimension_semantics<arbitrary>], iteration_bounds = array<i64: 1>, scalar_prefetch = 0 : i64, scratch_operands = 0 : i64, tpu.core_type = #tpu.core_type<tc>, window_params = [{pipeline_mode = #tpu.pipeline_mode<synchronous>, transform_indices = @transform_0, window_bounds = array<i64: 8, 2, 32>}, {pipeline_mode = #tpu.pipeline_mode<synchronous>, transform_indices = @transform_1, window_bounds = array<i64: 32, 768>}, {pipeline_mode = #tpu.pipeline_mode<synchronous>, transform_indices = @transform_2, window_bounds = array<i64: 1, 768>}, {pipeline_mode = #tpu.pipeline_mode<synchronous>, transform_indices = @transform_3, window_bounds = array<i64: 256, 128>}, {pipeline_mode = #tpu.pipeline_mode<synchronous>, transform_indices = @transform_4, window_bounds = array<i64: 1, 128>}, {pipeline_mode = #tpu.pipeline_mode<synchronous>, transform_indices = @transform_5, window_bounds = array<i64: 8, 256>}]} {
    %c0 = arith.constant 0 : index
    %c0_0 = arith.constant 0 : index
    %c0_1 = arith.constant 0 : index
    %0 = vector.load %arg1[%c0, %c0_0, %c0_1] : memref<8x2x32xf32, #tpu.memory_space<vmem>>, vector<8x2x32xf32>
    %1 = vector.extract_strided_slice %0 {offsets = [0, 0, 0], sizes = [8, 1, 32], strides = [1, 1, 1]} : vector<8x2x32xf32> to vector<8x1x32xf32>
    %2 = vector.shape_cast %1 : vector<8x1x32xf32> to vector<8x32xf32>
    %3 = vector.extract_strided_slice %0 {offsets = [0, 1, 0], sizes = [8, 1, 32], strides = [1, 1, 1]} : vector<8x2x32xf32> to vector<8x1x32xf32>
    %4 = vector.shape_cast %3 : vector<8x1x32xf32> to vector<8x32xf32>
    %5 = tpu.concatenate %2, %4 in 0 : vector<8x32xf32>, vector<8x32xf32> -> vector<16x32xf32>
    %c0_2 = arith.constant 0 : index
    %c0_3 = arith.constant 0 : index
    %6 = vector.load %arg2[%c0_2, %c0_3] : memref<32x768xf32, #tpu.memory_space<vmem>>, vector<32x768xf32>
    %cst = arith.constant dense<0.000000e+00> : vector<16x768xf32>
    %7 = tpu.matmul %5, %6, %cst {dimension_numbers = #tpu.dot_dimension_numbers<[1], [0], [0], [1], [0, 0, 1, 1], [], []>} : vector<16x32xf32>, vector<32x768xf32>, vector<16x768xf32> -> vector<16x768xf32>
    %c0_4 = arith.constant 0 : index
    %c0_5 = arith.constant 0 : index
    %8 = vector.load %arg3[%c0_4, %c0_5] : memref<1x768xf32, #tpu.memory_space<vmem>>, vector<1x768xf32>
    %9 = vector.broadcast %8 : vector<1x768xf32> to vector<16x768xf32>
    %10 = arith.addf %7, %9 : vector<16x768xf32>
    %11 = vector.extract_strided_slice %10 {offsets = [0, 0], sizes = [8, 32], strides = [1, 1]} : vector<16x768xf32> to vector<8x32xf32>
    %12 = vector.shape_cast %11 : vector<8x32xf32> to vector<1x8x32xf32>
    %13 = vector.extract_strided_slice %10 {offsets = [0, 32], sizes = [8, 32], strides = [1, 1]} : vector<16x768xf32> to vector<8x32xf32>
    %14 = vector.shape_cast %13 : vector<8x32xf32> to vector<1x8x32xf32>
    %15 = vector.extract_strided_slice %10 {offsets = [0, 64], sizes = [8, 32], strides = [1, 1]} : vector<16x768xf32> to vector<8x32xf32>
    %16 = vector.shape_cast %15 : vector<8x32xf32> to vector<1x8x32xf32>
    %17 = vector.extract_strided_slice %10 {offsets = [0, 96], sizes = [8, 32], strides = [1, 1]} : vector<16x768xf32> to vector<8x32xf32>
    %18 = vector.shape_cast %17 : vector<8x32xf32> to vector<1x8x32xf32>
    %19 = vector.extract_strided_slice %10 {offsets = [0, 128], sizes = [8, 32], strides = [1, 1]} : vector<16x768xf32> to vector<8x32xf32>
    %20 = vector.shape_cast %19 : vector<8x32xf32> to vector<1x8x32xf32>
    %21 = vector.extract_strided_slice %10 {offsets = [0, 160], sizes = [8, 32], strides = [1, 1]} : vector<16x768xf32> to vector<8x32xf32>
    %22 = vector.shape_cast %21 : vector<8x32xf32> to vector<1x8x32xf32>
    %23 = vector.extract_strided_slice %10 {offsets = [0, 192], sizes = [8, 32], strides = [1, 1]} : vector<16x768xf32> to vector<8x32xf32>
    %24 = vector.shape_cast %23 : vector<8x32xf32> to vector<1x8x32xf32>
    %25 = vector.extract_strided_slice %10 {offsets = [0, 224], sizes = [8, 32], strides = [1, 1]} : vector<16x768xf32> to vector<8x32xf32>
    %26 = vector.shape_cast %25 : vector<8x32xf32> to vector<1x8x32xf32>
    %27 = vector.extract_strided_slice %10 {offsets = [8, 0], sizes = [8, 32], strides = [1, 1]} : vector<16x768xf32> to vector<8x32xf32>
    %28 = vector.shape_cast %27 : vector<8x32xf32> to vector<1x8x32xf32>
    %29 = vector.extract_strided_slice %10 {offsets = [8, 32], sizes = [8, 32], strides = [1, 1]} : vector<16x768xf32> to vector<8x32xf32>
    %30 = vector.shape_cast %29 : vector<8x32xf32> to vector<1x8x32xf32>
    %31 = vector.extract_strided_slice %10 {offsets = [8, 64], sizes = [8, 32], strides = [1, 1]} : vector<16x768xf32> to vector<8x32xf32>
    %32 = vector.shape_cast %31 : vector<8x32xf32> to vector<1x8x32xf32>
    %33 = vector.extract_strided_slice %10 {offsets = [8, 96], sizes = [8, 32], strides = [1, 1]} : vector<16x768xf32> to vector<8x32xf32>
    %34 = vector.shape_cast %33 : vector<8x32xf32> to vector<1x8x32xf32>
    %35 = vector.extract_strided_slice %10 {offsets = [8, 128], sizes = [8, 32], strides = [1, 1]} : vector<16x768xf32> to vector<8x32xf32>
    %36 = vector.shape_cast %35 : vector<8x32xf32> to vector<1x8x32xf32>
    %37 = vector.extract_strided_slice %10 {offsets = [8, 160], sizes = [8, 32], strides = [1, 1]} : vector<16x768xf32> to vector<8x32xf32>
    %38 = vector.shape_cast %37 : vector<8x32xf32> to vector<1x8x32xf32>
    %39 = vector.extract_strided_slice %10 {offsets = [8, 192], sizes = [8, 32], strides = [1, 1]} : vector<16x768xf32> to vector<8x32xf32>
    %40 = vector.shape_cast %39 : vector<8x32xf32> to vector<1x8x32xf32>
    %41 = vector.extract_strided_slice %10 {offsets = [8, 224], sizes = [8, 32], strides = [1, 1]} : vector<16x768xf32> to vector<8x32xf32>
    %42 = vector.shape_cast %41 : vector<8x32xf32> to vector<1x8x32xf32>
    %43 = tpu.concatenate %12, %14, %16, %18, %20, %22, %24, %26, %28, %30, %32, %34, %36, %38, %40, %42 in 0 : vector<1x8x32xf32>, vector<1x8x32xf32>, vector<1x8x32xf32>, vector<1x8x32xf32>, vector<1x8x32xf32>, vector<1x8x32xf32>, vector<1x8x32xf32>, vector<1x8x32xf32>, vector<1x8x32xf32>, vector<1x8x32xf32>, vector<1x8x32xf32>, vector<1x8x32xf32>, vector<1x8x32xf32>, vector<1x8x32xf32>, vector<1x8x32xf32>, vector<1x8x32xf32> -> vector<16x8x32xf32>
    %44 = vector.extract_strided_slice %10 {offsets = [0, 256], sizes = [8, 32], strides = [1, 1]} : vector<16x768xf32> to vector<8x32xf32>
    %45 = vector.shape_cast %44 : vector<8x32xf32> to vector<1x8x32xf32>
    %46 = vector.extract_strided_slice %10 {offsets = [0, 288], sizes = [8, 32], strides = [1, 1]} : vector<16x768xf32> to vector<8x32xf32>
    %47 = vector.shape_cast %46 : vector<8x32xf32> to vector<1x8x32xf32>
    %48 = vector.extract_strided_slice %10 {offsets = [0, 320], sizes = [8, 32], strides = [1, 1]} : vector<16x768xf32> to vector<8x32xf32>
    %49 = vector.shape_cast %48 : vector<8x32xf32> to vector<1x8x32xf32>
    %50 = vector.extract_strided_slice %10 {offsets = [0, 352], sizes = [8, 32], strides = [1, 1]} : vector<16x768xf32> to vector<8x32xf32>
    %51 = vector.shape_cast %50 : vector<8x32xf32> to vector<1x8x32xf32>
    %52 = vector.extract_strided_slice %10 {offsets = [0, 384], sizes = [8, 32], strides = [1, 1]} : vector<16x768xf32> to vector<8x32xf32>
    %53 = vector.shape_cast %52 : vector<8x32xf32> to vector<1x8x32xf32>
    %54 = vector.extract_strided_slice %10 {offsets = [0, 416], sizes = [8, 32], strides = [1, 1]} : vector<16x768xf32> to vector<8x32xf32>
    %55 = vector.shape_cast %54 : vector<8x32xf32> to vector<1x8x32xf32>
    %56 = vector.extract_strided_slice %10 {offsets = [0, 448], sizes = [8, 32], strides = [1, 1]} : vector<16x768xf32> to vector<8x32xf32>
    %57 = vector.shape_cast %56 : vector<8x32xf32> to vector<1x8x32xf32>
    %58 = vector.extract_strided_slice %10 {offsets = [0, 480], sizes = [8, 32], strides = [1, 1]} : vector<16x768xf32> to vector<8x32xf32>
    %59 = vector.shape_cast %58 : vector<8x32xf32> to vector<1x8x32xf32>
    %60 = vector.extract_strided_slice %10 {offsets = [8, 256], sizes = [8, 32], strides = [1, 1]} : vector<16x768xf32> to vector<8x32xf32>
    %61 = vector.shape_cast %60 : vector<8x32xf32> to vector<1x8x32xf32>
    %62 = vector.extract_strided_slice %10 {offsets = [8, 288], sizes = [8, 32], strides = [1, 1]} : vector<16x768xf32> to vector<8x32xf32>
    %63 = vector.shape_cast %62 : vector<8x32xf32> to vector<1x8x32xf32>
    %64 = vector.extract_strided_slice %10 {offsets = [8, 320], sizes = [8, 32], strides = [1, 1]} : vector<16x768xf32> to vector<8x32xf32>
    %65 = vector.shape_cast %64 : vector<8x32xf32> to vector<1x8x32xf32>
    %66 = vector.extract_strided_slice %10 {offsets = [8, 352], sizes = [8, 32], strides = [1, 1]} : vector<16x768xf32> to vector<8x32xf32>
    %67 = vector.shape_cast %66 : vector<8x32xf32> to vector<1x8x32xf32>
    %68 = vector.extract_strided_slice %10 {offsets = [8, 384], sizes = [8, 32], strides = [1, 1]} : vector<16x768xf32> to vector<8x32xf32>
    %69 = vector.shape_cast %68 : vector<8x32xf32> to vector<1x8x32xf32>
    %70 = vector.extract_strided_slice %10 {offsets = [8, 416], sizes = [8, 32], strides = [1, 1]} : vector<16x768xf32> to vector<8x32xf32>
    %71 = vector.shape_cast %70 : vector<8x32xf32> to vector<1x8x32xf32>
    %72 = vector.extract_strided_slice %10 {offsets = [8, 448], sizes = [8, 32], strides = [1, 1]} : vector<16x768xf32> to vector<8x32xf32>
    %73 = vector.shape_cast %72 : vector<8x32xf32> to vector<1x8x32xf32>
    %74 = vector.extract_strided_slice %10 {offsets = [8, 480], sizes = [8, 32], strides = [1, 1]} : vector<16x768xf32> to vector<8x32xf32>
    %75 = vector.shape_cast %74 : vector<8x32xf32> to vector<1x8x32xf32>
    %76 = tpu.concatenate %45, %47, %49, %51, %53, %55, %57, %59, %61, %63, %65, %67, %69, %71, %73, %75 in 0 : vector<1x8x32xf32>, vector<1x8x32xf32>, vector<1x8x32xf32>, vector<1x8x32xf32>, vector<1x8x32xf32>, vector<1x8x32xf32>, vector<1x8x32xf32>, vector<1x8x32xf32>, vector<1x8x32xf32>, vector<1x8x32xf32>, vector<1x8x32xf32>, vector<1x8x32xf32>, vector<1x8x32xf32>, vector<1x8x32xf32>, vector<1x8x32xf32>, vector<1x8x32xf32> -> vector<16x8x32xf32>
    %77 = vector.extract_strided_slice %10 {offsets = [0, 512], sizes = [8, 32], strides = [1, 1]} : vector<16x768xf32> to vector<8x32xf32>
    %78 = vector.shape_cast %77 : vector<8x32xf32> to vector<1x8x32xf32>
    %79 = vector.extract_strided_slice %10 {offsets = [0, 544], sizes = [8, 32], strides = [1, 1]} : vector<16x768xf32> to vector<8x32xf32>
    %80 = vector.shape_cast %79 : vector<8x32xf32> to vector<1x8x32xf32>
    %81 = vector.extract_strided_slice %10 {offsets = [0, 576], sizes = [8, 32], strides = [1, 1]} : vector<16x768xf32> to vector<8x32xf32>
    %82 = vector.shape_cast %81 : vector<8x32xf32> to vector<1x8x32xf32>
    %83 = vector.extract_strided_slice %10 {offsets = [0, 608], sizes = [8, 32], strides = [1, 1]} : vector<16x768xf32> to vector<8x32xf32>
    %84 = vector.shape_cast %83 : vector<8x32xf32> to vector<1x8x32xf32>
    %85 = vector.extract_strided_slice %10 {offsets = [0, 640], sizes = [8, 32], strides = [1, 1]} : vector<16x768xf32> to vector<8x32xf32>
    %86 = vector.shape_cast %85 : vector<8x32xf32> to vector<1x8x32xf32>
    %87 = vector.extract_strided_slice %10 {offsets = [0, 672], sizes = [8, 32], strides = [1, 1]} : vector<16x768xf32> to vector<8x32xf32>
    %88 = vector.shape_cast %87 : vector<8x32xf32> to vector<1x8x32xf32>
    %89 = vector.extract_strided_slice %10 {offsets = [0, 704], sizes = [8, 32], strides = [1, 1]} : vector<16x768xf32> to vector<8x32xf32>
    %90 = vector.shape_cast %89 : vector<8x32xf32> to vector<1x8x32xf32>
    %91 = vector.extract_strided_slice %10 {offsets = [0, 736], sizes = [8, 32], strides = [1, 1]} : vector<16x768xf32> to vector<8x32xf32>
    %92 = vector.shape_cast %91 : vector<8x32xf32> to vector<1x8x32xf32>
    %93 = vector.extract_strided_slice %10 {offsets = [8, 512], sizes = [8, 32], strides = [1, 1]} : vector<16x768xf32> to vector<8x32xf32>
    %94 = vector.shape_cast %93 : vector<8x32xf32> to vector<1x8x32xf32>
    %95 = vector.extract_strided_slice %10 {offsets = [8, 544], sizes = [8, 32], strides = [1, 1]} : vector<16x768xf32> to vector<8x32xf32>
    %96 = vector.shape_cast %95 : vector<8x32xf32> to vector<1x8x32xf32>
    %97 = vector.extract_strided_slice %10 {offsets = [8, 576], sizes = [8, 32], strides = [1, 1]} : vector<16x768xf32> to vector<8x32xf32>
    %98 = vector.shape_cast %97 : vector<8x32xf32> to vector<1x8x32xf32>
    %99 = vector.extract_strided_slice %10 {offsets = [8, 608], sizes = [8, 32], strides = [1, 1]} : vector<16x768xf32> to vector<8x32xf32>
    %100 = vector.shape_cast %99 : vector<8x32xf32> to vector<1x8x32xf32>
    %101 = vector.extract_strided_slice %10 {offsets = [8, 640], sizes = [8, 32], strides = [1, 1]} : vector<16x768xf32> to vector<8x32xf32>
    %102 = vector.shape_cast %101 : vector<8x32xf32> to vector<1x8x32xf32>
    %103 = vector.extract_strided_slice %10 {offsets = [8, 672], sizes = [8, 32], strides = [1, 1]} : vector<16x768xf32> to vector<8x32xf32>
    %104 = vector.shape_cast %103 : vector<8x32xf32> to vector<1x8x32xf32>
    %105 = vector.extract_strided_slice %10 {offsets = [8, 704], sizes = [8, 32], strides = [1, 1]} : vector<16x768xf32> to vector<8x32xf32>
    %106 = vector.shape_cast %105 : vector<8x32xf32> to vector<1x8x32xf32>
    %107 = vector.extract_strided_slice %10 {offsets = [8, 736], sizes = [8, 32], strides = [1, 1]} : vector<16x768xf32> to vector<8x32xf32>
    %108 = vector.shape_cast %107 : vector<8x32xf32> to vector<1x8x32xf32>
    %109 = tpu.concatenate %78, %80, %82, %84, %86, %88, %90, %92, %94, %96, %98, %100, %102, %104, %106, %108 in 0 : vector<1x8x32xf32>, vector<1x8x32xf32>, vector<1x8x32xf32>, vector<1x8x32xf32>, vector<1x8x32xf32>, vector<1x8x32xf32>, vector<1x8x32xf32>, vector<1x8x32xf32>, vector<1x8x32xf32>, vector<1x8x32xf32>, vector<1x8x32xf32>, vector<1x8x32xf32>, vector<1x8x32xf32>, vector<1x8x32xf32>, vector<1x8x32xf32>, vector<1x8x32xf32> -> vector<16x8x32xf32>
    "tpu.trace_start"() <{level = 10 : i32, message = "gtk,gsk->gts"}> : () -> ()
    %cst_6 = arith.constant dense<0.000000e+00> : vector<16x8x8xf32>
    %110 = tpu.matmul %43, %76, %cst_6 {dimension_numbers = #tpu.dot_dimension_numbers<[2], [2], [1], [1], [0, 0, 0, 1, 1, 1], [0], [0]>} : vector<16x8x32xf32>, vector<16x8x32xf32>, vector<16x8x8xf32> -> vector<16x8x8xf32>
    "tpu.trace_stop"() : () -> ()
    %cst_7 = arith.constant 0.176776692 : f32
    %111 = vector.broadcast %cst_7 : f32 to vector<16x8x8xf32>
    %112 = arith.mulf %110, %111 : vector<16x8x8xf32>
    %cst_8 = arith.constant dense<0xFF800000> : vector<16x8xf32>
    %113 = vector.multi_reduction <maximumf>, %112, %cst_8 [2] : vector<16x8x8xf32> to vector<16x8xf32>
    %114 = vector.shape_cast %113 : vector<16x8xf32> to vector<16x8x1xf32>
    %115 = vector.broadcast %114 : vector<16x8x1xf32> to vector<16x8x8xf32>
    %116 = arith.subf %112, %115 : vector<16x8x8xf32>
    %117 = math.exp %116 : vector<16x8x8xf32>
    %cst_9 = arith.constant dense<0.000000e+00> : vector<16x8xf32>
    %118 = vector.multi_reduction <add>, %117, %cst_9 [2] : vector<16x8x8xf32> to vector<16x8xf32>
    %119 = vector.shape_cast %118 : vector<16x8xf32> to vector<16x8x1xf32>
    %120 = vector.broadcast %119 : vector<16x8x1xf32> to vector<16x8x8xf32>
    %121 = arith.divf %117, %120 : vector<16x8x8xf32>
    "tpu.trace_start"() <{level = 10 : i32, message = "gts,gsk->gtk"}> : () -> ()
    %cst_10 = arith.constant dense<0.000000e+00> : vector<16x8x32xf32>
    %122 = tpu.matmul %121, %109, %cst_10 {dimension_numbers = #tpu.dot_dimension_numbers<[2], [1], [1], [2], [0, 0, 0, 1, 1, 2], [0], [0]>} : vector<16x8x8xf32>, vector<16x8x32xf32>, vector<16x8x32xf32> -> vector<16x8x32xf32>
    "tpu.trace_stop"() : () -> ()
    %123 = vector.extract_strided_slice %122 {offsets = [0, 0, 0], sizes = [1, 8, 32], strides = [1, 1, 1]} : vector<16x8x32xf32> to vector<1x8x32xf32>
    %124 = vector.shape_cast %123 : vector<1x8x32xf32> to vector<8x32xf32>
    %125 = vector.extract_strided_slice %122 {offsets = [1, 0, 0], sizes = [1, 8, 32], strides = [1, 1, 1]} : vector<16x8x32xf32> to vector<1x8x32xf32>
    %126 = vector.shape_cast %125 : vector<1x8x32xf32> to vector<8x32xf32>
    %127 = vector.extract_strided_slice %122 {offsets = [2, 0, 0], sizes = [1, 8, 32], strides = [1, 1, 1]} : vector<16x8x32xf32> to vector<1x8x32xf32>
    %128 = vector.shape_cast %127 : vector<1x8x32xf32> to vector<8x32xf32>
    %129 = vector.extract_strided_slice %122 {offsets = [3, 0, 0], sizes = [1, 8, 32], strides = [1, 1, 1]} : vector<16x8x32xf32> to vector<1x8x32xf32>
    %130 = vector.shape_cast %129 : vector<1x8x32xf32> to vector<8x32xf32>
    %131 = vector.extract_strided_slice %122 {offsets = [4, 0, 0], sizes = [1, 8, 32], strides = [1, 1, 1]} : vector<16x8x32xf32> to vector<1x8x32xf32>
    %132 = vector.shape_cast %131 : vector<1x8x32xf32> to vector<8x32xf32>
    %133 = vector.extract_strided_slice %122 {offsets = [5, 0, 0], sizes = [1, 8, 32], strides = [1, 1, 1]} : vector<16x8x32xf32> to vector<1x8x32xf32>
    %134 = vector.shape_cast %133 : vector<1x8x32xf32> to vector<8x32xf32>
    %135 = vector.extract_strided_slice %122 {offsets = [6, 0, 0], sizes = [1, 8, 32], strides = [1, 1, 1]} : vector<16x8x32xf32> to vector<1x8x32xf32>
    %136 = vector.shape_cast %135 : vector<1x8x32xf32> to vector<8x32xf32>
    %137 = vector.extract_strided_slice %122 {offsets = [7, 0, 0], sizes = [1, 8, 32], strides = [1, 1, 1]} : vector<16x8x32xf32> to vector<1x8x32xf32>
    %138 = vector.shape_cast %137 : vector<1x8x32xf32> to vector<8x32xf32>
    %139 = tpu.concatenate %124, %126, %128, %130, %132, %134, %136, %138 in 1 : vector<8x32xf32>, vector<8x32xf32>, vector<8x32xf32>, vector<8x32xf32>, vector<8x32xf32>, vector<8x32xf32>, vector<8x32xf32>, vector<8x32xf32> -> vector<8x256xf32>
    %140 = vector.extract_strided_slice %122 {offsets = [8, 0, 0], sizes = [1, 8, 32], strides = [1, 1, 1]} : vector<16x8x32xf32> to vector<1x8x32xf32>
    %141 = vector.shape_cast %140 : vector<1x8x32xf32> to vector<8x32xf32>
    %142 = vector.extract_strided_slice %122 {offsets = [9, 0, 0], sizes = [1, 8, 32], strides = [1, 1, 1]} : vector<16x8x32xf32> to vector<1x8x32xf32>
    %143 = vector.shape_cast %142 : vector<1x8x32xf32> to vector<8x32xf32>
    %144 = vector.extract_strided_slice %122 {offsets = [10, 0, 0], sizes = [1, 8, 32], strides = [1, 1, 1]} : vector<16x8x32xf32> to vector<1x8x32xf32>
    %145 = vector.shape_cast %144 : vector<1x8x32xf32> to vector<8x32xf32>
    %146 = vector.extract_strided_slice %122 {offsets = [11, 0, 0], sizes = [1, 8, 32], strides = [1, 1, 1]} : vector<16x8x32xf32> to vector<1x8x32xf32>
    %147 = vector.shape_cast %146 : vector<1x8x32xf32> to vector<8x32xf32>
    %148 = vector.extract_strided_slice %122 {offsets = [12, 0, 0], sizes = [1, 8, 32], strides = [1, 1, 1]} : vector<16x8x32xf32> to vector<1x8x32xf32>
    %149 = vector.shape_cast %148 : vector<1x8x32xf32> to vector<8x32xf32>
    %150 = vector.extract_strided_slice %122 {offsets = [13, 0, 0], sizes = [1, 8, 32], strides = [1, 1, 1]} : vector<16x8x32xf32> to vector<1x8x32xf32>
    %151 = vector.shape_cast %150 : vector<1x8x32xf32> to vector<8x32xf32>
    %152 = vector.extract_strided_slice %122 {offsets = [14, 0, 0], sizes = [1, 8, 32], strides = [1, 1, 1]} : vector<16x8x32xf32> to vector<1x8x32xf32>
    %153 = vector.shape_cast %152 : vector<1x8x32xf32> to vector<8x32xf32>
    %154 = vector.extract_strided_slice %122 {offsets = [15, 0, 0], sizes = [1, 8, 32], strides = [1, 1, 1]} : vector<16x8x32xf32> to vector<1x8x32xf32>
    %155 = vector.shape_cast %154 : vector<1x8x32xf32> to vector<8x32xf32>
    %156 = tpu.concatenate %141, %143, %145, %147, %149, %151, %153, %155 in 1 : vector<8x32xf32>, vector<8x32xf32>, vector<8x32xf32>, vector<8x32xf32>, vector<8x32xf32>, vector<8x32xf32>, vector<8x32xf32>, vector<8x32xf32> -> vector<8x256xf32>
    %157 = tpu.concatenate %139, %156 in 0 : vector<8x256xf32>, vector<8x256xf32> -> vector<16x256xf32>
    %c0_11 = arith.constant 0 : index
    %c0_12 = arith.constant 0 : index
    %158 = vector.load %arg4[%c0_11, %c0_12] : memref<256x128xf32, #tpu.memory_space<vmem>>, vector<256x128xf32>
    %cst_13 = arith.constant dense<0.000000e+00> : vector<16x128xf32>
    %159 = tpu.matmul %157, %158, %cst_13 {dimension_numbers = #tpu.dot_dimension_numbers<[1], [0], [0], [1], [0, 0, 1, 1], [], []>} : vector<16x256xf32>, vector<256x128xf32>, vector<16x128xf32> -> vector<16x128xf32>
    %c0_14 = arith.constant 0 : index
    %c0_15 = arith.constant 0 : index
    %160 = vector.load %arg5[%c0_14, %c0_15] : memref<1x128xf32, #tpu.memory_space<vmem>>, vector<1x128xf32>
    %161 = vector.broadcast %160 : vector<1x128xf32> to vector<16x128xf32>
    %162 = arith.addf %159, %161 : vector<16x128xf32>
    %163 = vector.extract_strided_slice %162 {offsets = [0, 0], sizes = [8, 128], strides = [1, 1]} : vector<16x128xf32> to vector<8x128xf32>
    %164 = vector.extract_strided_slice %162 {offsets = [8, 0], sizes = [8, 128], strides = [1, 1]} : vector<16x128xf32> to vector<8x128xf32>
    %165 = tpu.concatenate %163, %164 in 1 : vector<8x128xf32>, vector<8x128xf32> -> vector<8x256xf32>
    %c0_16 = arith.constant 0 : index
    %c0_17 = arith.constant 0 : index
    %166 = vector.load %arg6[%c0_16, %c0_17] : memref<8x256xf32, #tpu.memory_space<vmem>>, vector<8x256xf32>
    tpu.vector_store %arg6[%c0_16, %c0_17], %165 {strides = array<i32>} : memref<8x256xf32, #tpu.memory_space<vmem>>, vector<8x256xf32>,
    return
  }
  func.func @transform_0(%arg0: i32) -> (i32, i32, i32) {
    %c0_i32 = arith.constant 0 : i32
    %c0_i32_0 = arith.constant 0 : i32
    %c0_i32_1 = arith.constant 0 : i32
    %c0_i32_2 = arith.constant 0 : i32
    return %c0_i32, %c0_i32_0, %c0_i32_1 : i32, i32, i32
  }
  func.func @transform_1(%arg0: i32) -> (i32, i32) {
    %c0_i32 = arith.constant 0 : i32
    %c0_i32_0 = arith.constant 0 : i32
    %c0_i32_1 = arith.constant 0 : i32
    return %c0_i32, %c0_i32_0 : i32, i32
  }
  func.func @transform_2(%arg0: i32) -> (i32, i32) {
    %c0_i32 = arith.constant 0 : i32
    %c0_i32_0 = arith.constant 0 : i32
    %c0_i32_1 = arith.constant 0 : i32
    return %c0_i32, %c0_i32_0 : i32, i32
  }
  func.func @transform_3(%arg0: i32) -> (i32, i32) {
    %c0_i32 = arith.constant 0 : i32
    %c0_i32_0 = arith.constant 0 : i32
    %c0_i32_1 = arith.constant 0 : i32
    return %c0_i32, %c0_i32_0 : i32, i32
  }
  func.func @transform_4(%arg0: i32) -> (i32, i32) {
    %c0_i32 = arith.constant 0 : i32
    %c0_i32_0 = arith.constant 0 : i32
    %c0_i32_1 = arith.constant 0 : i32
    return %c0_i32, %c0_i32_0 : i32, i32
  }
  func.func @transform_5(%arg0: i32) -> (i32, i32) {
    %c0_i32 = arith.constant 0 : i32
    %c0_i32_0 = arith.constant 0 : i32
    %c0_i32_1 = arith.constant 0 : i32
    return %c0_i32, %c0_i32_0 : i32, i32
  }
}

</mosaic_0001>

<bundles_post_ra>
// kernel: multi_headed_attention.1
= control target key start
LH: loop header
LB: loop body
LE: loop exit
PB: predicated region body
PF: predicated region fallthrough
CT: control target
= control target key end

     0   :  { %10 = vsyncpa [#allocation3], 0  ;;  %s2521_s0 = inlined_call_operand.hbm [shape: f32[8,2,32], index: 0, kind: input, shape index: {}]   ;;  %s2522_s1 = inlined_call_operand.hbm [shape: f32[32,768], index: 1, kind: input, shape index: {}]   ;;  %s2523_s2 = inlined_call_operand.hbm [shape: f32[1,768], index: 2, kind: input, shape index: {}]   ;;  %s2524_s3 = inlined_call_operand.hbm [shape: f32[256,128], index: 3, kind: input, shape index: {}]   ;;  %s2525_s4 = inlined_call_operand.vmem [shape: f32[1,128], index: 4, kind: input, shape index: {}]   ;;  %s2526_s5 = inlined_call_operand.vmem [shape: f32[8,256], index: 5, kind: output, shape index: {}]  }
   0x1   :  { %11 = vsyncpa [#allocation5], 0  ;;  %s30_s20 = sshll.u32 %s2522_s1, 4  ;;  %s31_s20 = int_to_ptr.hbm [resolvable:$true] %s30_s20 }
   0x2   :  { %12 = vsyncpa [#allocation8], 0  ;;  %s2014_s21 = smov [#allocation4]   ;;  %s17_s25 = sshll.u32 %s2521_s0, 4  ;;  %s18_s25 = int_to_ptr.hbm [resolvable:$true] %s17_s25 }
   0x3   :  { %s32_s22 = sshll.u32 %s2014_s21, 4  ;;  %s2015_s26 = smov 768   ;;  %s33_s22 = int_to_ptr.vmem [resolvable:$true] %s32_s22 }
   0x4   :  { %s2016_s27 = smov 48   ;;  %s2017_s28 = smov [#allocation2]  }
   0x5   :  { %38 = dma.hbm_to_vmem [thread:$0]  %s31_s20, 3072, %s33_s22, [#allocation5], %s2015_s26, %s2015_s26, %s2016_s27  }
   0x6   :  { %s19_s29 = sshll.u32 %s2017_s28, 4  ;;  %s2018_s30 = smov 32   ;;  %s20_s29 = int_to_ptr.vmem [resolvable:$true] %s19_s29 }
   0x7   :  { %s2019_s6 = smov 2   ;;  %s44_s8 = sshll.u32 %s2523_s2, 4  ;;  %s45_s8 = int_to_ptr.hbm [resolvable:$true] %s44_s8 }
   0x8   :  { %25 = dma.hbm_to_vmem [thread:$0]  %s18_s25, 256, %s20_s29, [#allocation3], %s2018_s30, %s2018_s30, %s2019_s6  }
   0x9   :  { %s2020_s9 = smov [#allocation6]   ;;  %s54_s12 = sshll.u32 %s2524_s3, 4  ;;  %s55_s12 = int_to_ptr.hbm [resolvable:$true] %s54_s12 }
   0xa   :  { %s46_s10 = sshll.u32 %s2020_s9, 4  ;;  %s2021_s13 = smov [#allocation7]   ;;  %s47_s10 = int_to_ptr.vmem [resolvable:$true] %s46_s10 }
   0xb   :  { %49 = dma.hbm_to_vmem [thread:$0]  %s45_s8, 96, %s47_s10, [#allocation5]  }
   0xc   :  { %s56_s14 = sshll.u32 %s2021_s13, 4  ;;  %s2022_s15 = smov 128   ;;  %s57_s14 = int_to_ptr.vmem [resolvable:$true] %s56_s14 }
   0xd   :  { %s2023_s16 = smov 8  }
   0xe   :  { %62 = dma.hbm_to_vmem [thread:$0]  %s55_s12, 4096, %s57_s14, [#allocation8], %s2022_s15, %s2022_s15, %s2023_s16  }
   0xf   :  { %2008 = dma.done.wait [#allocation3], 256  }
  0x10   :  { %2009 = vsyncadd [#allocation3], 4294967040 }
  0x11   :  { %2010 = dma.done.wait [#allocation5], 3168  }
  0x12   :  { %2011 = vsyncadd [#allocation5], 4294964128 }
  0x13   :  { %2012 = dma.done.wait [#allocation8], 4096  }
  0x14   :  { %2013 = vsyncadd [#allocation8], 4294963200  ;;  %v150_v0 = vld [vmem:[#allocation4 + $0x90] sm:$0xff]  ;;  %v151_v1 = vld [vmem:[#allocation4 + $0x98] sm:$0xff]  ;;  %vm98_vm0 = vcmask 1041409   ;;  %vm101_vm1 = vcmask 1042434  }
  0x15   :  { %v144_v2 = vld [vmem:[#allocation4 + $0x60] sm:$0xff]  ;;  %187 = vmatpush.msra.mxu2 %v150_v0  ;;  %210 = vmatpush.msra.mxu3 %v151_v1  ;;  %v145_v3 = vld [vmem:[#allocation4 + $0x68] sm:$0xff]  ;;  %v138_v4 = vld [vmem:[#allocation4 + $0x30] sm:$0xff]  ;;  %vm104_vm2 = vcmask 1043459   ;;  %vm107_vm3 = vcmask 1044484   ;;  %vm110_vm4 = vcmask 1045509  }
  0x16   :  { %v139_v5 = vld [vmem:[#allocation4 + $0x38] sm:$0xff]  ;;  %v132_v6 = vld [vmem:[#allocation4] sm:$0xff]  ;;  %v133_v7 = vld [vmem:[#allocation4 + $0x8] sm:$0xff]  ;;  %vm113_vm5 = vcmask 1046534   ;;  %vm116_vm6 = vcmask 1047559   ;;  %vm170_vm7 = vcmask 261120  }
  0x17   :  { %v81_v8 = vld [vmem:[#allocation2] sm:$0x3]  ;;  %188 = vmatpush.msra.mxu2 %v144_v2  ;;  %211 = vmatpush.msra.mxu3 %v145_v3  ;;  %v82_v9 = vld [vmem:[#allocation2 + $0x2] sm:$0x3]  ;;  %v83_v10 = vld [vmem:[#allocation2 + $0x4] sm:$0x3] }
  0x18   :  { %v84_v11 = vld [vmem:[#allocation2 + $0x6] sm:$0x3]  ;;  %v85_v12 = vld [vmem:[#allocation2 + $0x8] sm:$0x3]  ;;  %v86_v13 = vld [vmem:[#allocation2 + $0xa] sm:$0x3] }
  0x19   :  { %v2070_v14 = vld [vmem:[#allocation2 + $0xc] sm:$0x3]  ;;  %189 = vmatpush.msra.mxu2 %v138_v4  ;;  %212 = vmatpush.msra.mxu3 %v139_v5  ;;  %v2072_v15 = vld [vmem:[#allocation2 + $0xe] sm:$0x3]  ;;  %v97_v16 = vrot.slane %v82_v9, 7  ;;  %v100_v17 = vrot.slane %v83_v10, 6 }
  0x1a   :  { %v103_v18 = vrot.slane %v84_v11, 5  ;;  %v106_v19 = vrot.slane %v85_v12, 4  ;;  %v109_v20 = vrot.slane %v86_v13, 3  ;;  %v118_v21 = vrot.slane %v81_v8, 1  ;;  %v152_v22 = vld [vmem:[#allocation4 + $0xa0] sm:$0xff]  ;;  %v153_v23 = vld [vmem:[#allocation4 + $0xa8] sm:$0xff] }
  0x1b   :  { %190 = vmatpush.msra.mxu2 %v132_v6  ;;  %213 = vmatpush.msra.mxu3 %v133_v7  ;;  %v99_v24 = vsel %vm98_vm0, %v97_v16, %v81_v8  ;;  %v120_v25 = vrot.slane %v83_v10, 7  ;;  %v122_v26 = vrot.slane %v84_v11, 6  ;;  %v124_v27 = vrot.slane %v85_v12, 5  ;;  %v146_v28 = vld [vmem:[#allocation4 + $0x70] sm:$0xff]  ;;  %v147_v29 = vld [vmem:[#allocation4 + $0x78] sm:$0xff]  ;;  %v140_v33 = vld [vmem:[#allocation4 + $0x40] sm:$0xff] }
  0x1c   :  { %v102_v30 = vsel %vm101_vm1, %v100_v17, %v99_v24  ;;  %v112_v31 = vrot.slane %v2070_v14, 2  ;;  %v119_v32 = vsel %vm98_vm0, %v82_v9, %v118_v21  ;;  %v115_v35 = vrot.slane %v2072_v15, 1  ;;  %v141_v38 = vld [vmem:[#allocation4 + $0x48] sm:$0xff]  ;;  %v154_v39 = vld [vmem:[#allocation4 + $0xb0] sm:$0xff]  ;;  %v155_v40 = vld [vmem:[#allocation4 + $0xb8] sm:$0xff]  ;;  %s2024_s2 = smov 64  }
  0x1d   :  { %233 = vmatpush.msrb.mxu2 %v152_v22  ;;  %256 = vmatpush.msrb.mxu3 %v153_v23  ;;  %v105_v34 = vsel %vm104_vm2, %v103_v18, %v102_v30  ;;  %v121_v36 = vsel %vm101_vm1, %v120_v25, %v119_v32  ;;  %v126_v37 = vrot.slane %v86_v13, 4  ;;  %v148_v43 = vld [vmem:[#allocation4 + $0x80] sm:$0xff]  ;;  %v149_v44 = vld [vmem:[#allocation4 + $0x88] sm:$0xff]  ;;  %v128_v48 = vrot.slane %v2070_v14, 3  ;;  %v134_v49 = vld [vmem:[#allocation4 + $0x10] sm:$0xff]  ;;  %s2025_s3 = smov 96  }
  0x1e   :  { %v108_v41 = vsel %vm107_vm3, %v106_v19, %v105_v34  ;;  %v123_v42 = vsel %vm104_vm2, %v122_v26, %v121_v36  ;;  %279 = vmatpush.msra.mxu0 %v154_v39  ;;  %302 = vmatpush.msra.mxu1 %v155_v40  ;;  %v135_v50 = vld [vmem:[#allocation4 + $0x18] sm:$0xff]  ;;  %v142_v53 = vld [vmem:[#allocation4 + $0x50] sm:$0xff]  ;;  %v130_v55 = vrot.slane %v2072_v15, 2  ;;  %v136_v56 = vld [vmem:[#allocation4 + $0x20] sm:$0xff]  ;;  %vm809_vm8 = vcmask 64512  }
  0x1f   :  { %234 = vmatpush.msrb.mxu2 %v146_v28  ;;  %257 = vmatpush.msrb.mxu3 %v147_v29  ;;  %v111_v45 = vsel %vm110_vm4, %v109_v20, %v108_v41  ;;  %v125_v46 = vsel %vm107_vm3, %v124_v27, %v123_v42  ;;  %v143_v54 = vld [vmem:[#allocation4 + $0x58] sm:$0xff]  ;;  %v137_v57 = vld [vmem:[#allocation4 + $0x28] sm:$0xff]  ;;  %v2104_v60 = vld [vmem:[#allocation6] sm:$0x3f] }
  0x20   :  { %v114_v47 = vsel %vm113_vm5, %v112_v31, %v111_v45  ;;  %v127_v52 = vsel %vm110_vm4, %v126_v37, %v125_v46  ;;  %280 = vmatpush.msra.mxu0 %v148_v43  ;;  %303 = vmatpush.msra.mxu1 %v149_v44  ;;  %v158_v61 = vperm.slane %v2104_v60, 0  ;;  %v159_v1 = vperm.slane %v2104_v60, 1 }
  0x21   :  { %235 = vmatpush.msrb.mxu2 %v140_v33  ;;  %258 = vmatpush.msrb.mxu3 %v141_v38  ;;  %v117_v51 = vsel %vm116_vm6, %v115_v35, %v114_v47  ;;  %v129_v58 = vsel %vm113_vm5, %v128_v48, %v127_v52  ;;  %v160_v5 = vperm.slane %v2104_v60, 2  ;;  %v161_v6 = vperm.slane %v2104_v60, 3 }
  0x22   :  { %1715 = vmatmul.msk.f32.vlgmr.msra.gmra.mxu2 %vm170_vm7, %v117_v51  ;;  %1717 = vmatmul.msk.f32.vlgmr.msra.gmra.mxu3 %vm170_vm7, %v117_v51  ;;  %v131_v59 = vsel %vm116_vm6, %v130_v55, %v129_v58  ;;  %v162_v17 = vperm.slane %v2104_v60, 4  ;;  %v163_v19 = vperm.slane %v2104_v60, 5 }
  0x23   :  { %236 = vmatpush.msrb.mxu2 %v134_v49  ;;  %259 = vmatpush.msrb.mxu3 %v135_v50 }
  0x24   :  { %281 = vmatpush.msra.mxu0 %v142_v53  ;;  %304 = vmatpush.msra.mxu1 %v143_v54 }
  0x26   :  { %282 = vmatpush.msra.mxu0 %v136_v56  ;;  %305 = vmatpush.msra.mxu1 %v137_v57 }
  0x27   :  { %1723 = vmatmul.msk.f32.vlgmr.msra.gmra.mxu0 %vm170_vm7, %v117_v51  ;;  %1725 = vmatmul.msk.f32.vlgmr.msra.gmra.mxu1 %vm170_vm7, %v117_v51 }
  0x2a   :  { %1716 = vmatmul.msk.f32.gmra.mxu2 %vm170_vm7, %v131_v59  ;;  %1718 = vmatmul.msk.f32.gmra.mxu3 %vm170_vm7, %v131_v59 }
  0x2f   :  { %1724 = vmatmul.msk.f32.gmra.mxu0 %vm170_vm7, %v131_v59  ;;  %1726 = vmatmul.msk.f32.gmra.mxu1 %vm170_vm7, %v131_v59 }
  0x32   :  { %1719 = vmatmul.msk.f32.vlgmr.msrb.gmra.mxu2 %vm170_vm7, %v117_v51  ;;  %1721 = vmatmul.msk.f32.vlgmr.msrb.gmra.mxu3 %vm170_vm7, %v117_v51 }
  0x3a   :  { %1720 = vmatmul.msk.f32.gmra.mxu2 %vm170_vm7, %v131_v59  ;;  %1722 = vmatmul.msk.f32.gmra.mxu3 %vm170_vm7, %v131_v59 }
  0xa4   :  { %v284_v18 = vpop.f32.mrf.mxu0  ;;  %v307_v20 = vpop.f32.mrf.mxu1 }
  0xa5   :  { %v192_v62 = vpop.f32.mrf.mxu2  ;;  %v215_v63 = vpop.f32.mrf.mxu3  ;;  %v285_v21 = vadd.f32 %v284_v18, %v162_v17  ;;  %v308_v22 = vadd.f32 %v307_v20, %v163_v19 }
  0xa6   :  { %v193_v0 = vadd.f32 %v192_v62, %v158_v61  ;;  %v216_v2 = vadd.f32 %v215_v63, %v159_v1 }
  0xa7   :  { %v1792_v23 = vpack.i.bf16 %v308_v22, %v285_v21 }
  0xa8   :  { %316 = vrot.lane.b32.xlu2 %v193_v0, %s2024_s2  ;;  %314 = vrot.lane.b32.xlu0 %v193_v0, %s2025_s3 }
  0xac   :  { %v287_v26 = vpop.f32.mrf.mxu0 }
  0xad   :  { %v195_v3 = vpop.f32.mrf.mxu2  ;;  %v218_v4 = vpop.f32.mrf.mxu3  ;;  %v2149_v27 = vadd.f32 %v287_v26, %v162_v17 }
  0xae   :  { %v196_v15 = vadd.f32 %v195_v3, %v158_v61  ;;  %v219_v16 = vadd.f32 %v218_v4, %v159_v1 }
  0xb0   :  { %318 = vrot.lane.b32.xlu2 %v193_v0, %s2018_s30  ;;  %325 = vrot.lane.b32.xlu0 %v216_v2, %s2018_s30 }
  0xb5   :  { %v238_v7 = vpop.f32.mrf.mxu2  ;;  %v261_v8 = vpop.f32.mrf.mxu3 }
  0xb6   :  { %v239_v9 = vadd.f32 %v238_v7, %v160_v5  ;;  %v262_v10 = vadd.f32 %v261_v8, %v161_v6 }
  0xb8   :  { %1735 = vmatpush.xpose.msk.msrb.mxu0 %vm170_vm7, %v262_v10  ;;  %344 = vrot.lane.b32.xlu1 %v239_v9, %s2024_s2 }
  0xb9   :  { %1727 = vmatpush.xpose.msk.msra.mxu2 %vm170_vm7, %v239_v9  ;;  %323 = vrot.lane.b32.xlu2 %v216_v2, %s2024_s2 }
  0xba   :  { %342 = vrot.lane.b32.xlu0 %v239_v9, %s2025_s3 }
  0xbb   :  { %1736 = vmatmul.msk.f32.vlgmr.msrb.gmra.mxu0 %vm170_vm7, %v216_v2 }
  0xbc   :  { %1728 = vmatmul.msk.f32.vlgmr.msra.gmra.mxu2 %vm170_vm7, %v193_v0 }
  0xbd   :  { %v241_v11 = vpop.f32.mrf.mxu2  ;;  %v264_v12 = vpop.f32.mrf.mxu3 }
  0xbe   :  { %v242_v13 = vadd.f32 %v241_v11, %v160_v5  ;;  %v265_v14 = vadd.f32 %v264_v12, %v161_v6 }
  0xc0   :  { %1743 = vmatpush.xpose.msk.msra.mxu0 %vm170_vm7, %v242_v13  ;;  %346 = vrot.lane.b32.xlu1 %v239_v9, %s2018_s30 }
  0xc1   :  { %332 = vrot.lane.b32.xlu2 %v196_v15, %s2018_s30 }
  0xc2   :  { %330 = vrot.lane.b32.xlu0 %v196_v15, %s2024_s2 }
  0xc3   :  { %1744 = vmatmul.msk.f32.vlgmr.msra.gmra.mxu0 %vm170_vm7, %v196_v15 }
  0xc4   :  { %1751 = vmatpush.xpose.msk.msrb.mxu0 %vm170_vm7, %v265_v14 }
  0xc8   :  { %353 = vrot.lane.b32.xlu1 %v262_v10, %s2018_s30  ;;  %1212 = vmatpush.msra.mxu0 %v285_v21 }
  0xc9   :  { %360 = vrot.lane.b32.xlu2 %v242_v13, %s2018_s30 }
  0xca   :  { %351 = vrot.lane.b32.xlu0 %v262_v10, %s2024_s2 }
  0xcb   :  { %1752 = vmatmul.msk.f32.vlgmr.msrb.gmra.mxu0 %vm170_vm7, %v219_v16 }
  0xcc   :  { %1304 = vmatpush.msrb.mxu0 %v308_v22 }
  0xd0   :  { %349 = vrot.lane.b32.xlu1 %v262_v10, %s2025_s3 }
  0xd1   :  { %367 = vrot.lane.b32.xlu2 %v265_v14, %s2018_s30 }
  0xd2   :  { %321 = vrot.lane.b32.xlu0 %v216_v2, %s2025_s3 }
  0xd8   :  { %358 = vrot.lane.b32.xlu1 %v242_v13, %s2024_s2 }
  0xd9   :  { %339 = vrot.lane.b32.xlu2 %v219_v16, %s2018_s30 }
  0xda   :  { %337 = vrot.lane.b32.xlu0 %v219_v16, %s2024_s2 }
  0xe0   :  { %365 = vrot.lane.b32.xlu1 %v265_v14, %s2024_s2 }
  0xe1   :  { %335 = vrot.lane.b32.xlu2 %v219_v16, %s2025_s3 }
  0xe2   :  { %328 = vrot.lane.b32.xlu0 %v196_v15, %s2025_s3 }
  0xe8   :  { %356 = vrot.lane.b32.xlu1 %v242_v13, %s2025_s3 }
  0xe9   :  { %1788 = vrot.lane.b32.xlu2 %v1792_v23, %s2024_s2 }
  0xea   :  { %1793 = vrot.lane.b32.xlu0 %v1792_v23, %s2018_s30 }
  0xf0   :  { %363 = vrot.lane.b32.xlu1 %v265_v14, %s2025_s3  ;;  %v2196_v14 = vpop.f32.mrf.mxu1 }
  0xf8   :  { %1798 = vrot.lane.b32.xlu1 %v1792_v23, %s2025_s3 }
 0x102   :  { %v317_v24 = vpop.permute.xlu2 %316 }
 0x10a   :  { %v319_v25 = vpop.permute.xlu2 %318 }
 0x113   :  { %v324_v28 = vpop.permute.xlu2 %323 }
 0x11a   :  { %v315_v29 = vpop.permute.xlu0 %314 }
 0x11b   :  { %v333_v30 = vpop.permute.xlu2 %332 }
 0x122   :  { %v326_v31 = vpop.permute.xlu0 %325 }
 0x123   :  { %v361_v32 = vpop.permute.xlu2 %360 }
 0x12a   :  { %v345_v33 = vpop.permute.xlu1 %344 }
 0x12b   :  { %1731 = vmatpush.xpose.msk.msrb.mxu2 %vm170_vm7, %v345_v33  ;;  %v368_v36 = vpop.permute.xlu2 %367 }
 0x12c   :  { %v343_v34 = vpop.permute.xlu0 %342 }
 0x12d   :  { %1729 = vmatpush.xpose.msk.msra.mxu3 %vm170_vm7, %v343_v34 }
 0x12e   :  { %1732 = vmatmul.msk.f32.vlgmr.msrb.gmra.mxu2 %vm170_vm7, %v317_v24 }
 0x130   :  { %1730 = vmatmul.msk.f32.vlgmr.msra.gmra.mxu3 %vm170_vm7, %v315_v29 }
 0x132   :  { %v347_v35 = vpop.permute.xlu1 %346 }
 0x133   :  { %1733 = vmatpush.xpose.msk.msrb.mxu3 %vm170_vm7, %v347_v35  ;;  %v340_v43 = vpop.permute.xlu2 %339 }
 0x134   :  { %v331_v37 = vpop.permute.xlu0 %330 }
 0x138   :  { %1734 = vmatmul.msk.f32.vlgmr.msrb.gmra.mxu3 %vm170_vm7, %v319_v25  ;;  %v526_v38 = vpop.f32.mrf.mxu0 }
 0x139   :  { %v2157_v39 = vmul.f32 0.17677669, %v526_v38 }
 0x13a   :  { %v354_v40 = vpop.permute.xlu1 %353 }
 0x13b   :  { %1741 = vmatpush.xpose.msk.msra.mxu3 %vm170_vm7, %v354_v40  ;;  %v822_v41 = vsel %vm809_vm8, %v2157_v39, -inf  ;;  %v336_v52 = vpop.permute.xlu2 %335 }
 0x13c   :  { %v352_v42 = vpop.permute.xlu0 %351  ;;  %823 = vmax.xlane.f32.xlu0 %v822_v41 }
 0x13d   :  { %1739 = vmatpush.xpose.msk.msra.mxu2 %vm170_vm7, %v352_v42 }
 0x13f   :  { %1749 = vmatpush.xpose.msk.msrb.mxu3 %vm170_vm7, %v361_v32  ;;  %v430_v44 = vpop.f32.mrf.mxu2 }
 0x140   :  { %v2164_v45 = vmul.f32 0.17677669, %v430_v44  ;;  %1740 = vmatmul.msk.f32.vlgmr.msra.gmra.mxu2 %vm170_vm7, %v324_v28  ;;  %1742 = vmatmul.msk.f32.vlgmr.msra.gmra.mxu3 %vm170_vm7, %v326_v31  ;;  %v622_v46 = vpop.f32.mrf.mxu0 }
 0x141   :  { %v2169_v47 = vmul.f32 0.17677669, %v622_v46 }
 0x142   :  { %v350_v48 = vpop.permute.xlu1 %349  ;;  %v810_v49 = vsel %vm809_vm8, %v2164_v45, -inf }
 0x143   :  { %1757 = vmatpush.xpose.msk.msra.mxu3 %vm170_vm7, %v368_v36  ;;  %811 = vmax.xlane.f32.xlu2 %v810_v49  ;;  %v834_v50 = vsel %vm809_vm8, %v2169_v47, -inf  ;;  %v1789_v57 = vpop.permute.xlu2 %1788 }
 0x144   :  { %1737 = vmatpush.xpose.msk.msrb.mxu1 %vm170_vm7, %v350_v48  ;;  %835 = vmax.xlane.f32.xlu1 %v834_v50  ;;  %v322_v51 = vpop.permute.xlu0 %321  ;;  %v1790_v58 = vunpack.i.l.bf16 %v1789_v57  ;;  %v1791_v62 = vunpack.i.h.bf16 %v1789_v57 }
 0x147   :  { %1738 = vmatmul.msk.f32.vlgmr.msrb.gmra.mxu1 %vm170_vm7, %v322_v51 }
 0x148   :  { %1750 = vmatmul.msk.f32.vlgmr.msrb.gmra.mxu3 %vm170_vm7, %v333_v30  ;;  %v718_v53 = vpop.f32.mrf.mxu0 }
 0x149   :  { %v2178_v54 = vmul.f32 0.17677669, %v718_v53 }
 0x14a   :  { %v359_v55 = vpop.permute.xlu1 %358 }
 0x14b   :  { %1747 = vmatpush.xpose.msk.msrb.mxu2 %vm170_vm7, %v359_v55  ;;  %v846_v56 = vsel %vm809_vm8, %v2178_v54, -inf }
 0x14c   :  { %847 = vmax.xlane.f32.xlu2 %v846_v56  ;;  %v338_v61 = vpop.permute.xlu0 %337 }
 0x14e   :  { %1748 = vmatmul.msk.f32.vlgmr.msrb.gmra.mxu2 %vm170_vm7, %v331_v37 }
 0x150   :  { %1758 = vmatmul.msk.f32.vlgmr.msra.gmra.mxu3 %vm170_vm7, %v340_v43 }
 0x152   :  { %v366_v59 = vpop.permute.xlu1 %365 }
 0x153   :  { %1755 = vmatpush.xpose.msk.msra.mxu2 %vm170_vm7, %v366_v59 }
 0x154   :  { %v329_v0 = vpop.permute.xlu0 %328 }
 0x156   :  { %1756 = vmatmul.msk.f32.vlgmr.msra.gmra.mxu2 %vm170_vm7, %v338_v61 }
 0x157   :  { %1258 = vmatpush.msrb.mxu2 %v1790_v58 }
 0x159   :  { %1350 = vmatpush.msra.mxu2 %v1791_v62 }
 0x15a   :  { %v357_v63 = vpop.permute.xlu1 %356 }
 0x15b   :  { %1745 = vmatpush.xpose.msk.msra.mxu1 %vm170_vm7, %v357_v63 }
 0x15c   :  { %v1794_v2 = vpop.permute.xlu0 %1793 }
 0x15d   :  { %v1796_v3 = vunpack.i.h.bf16 %v1794_v2  ;;  %v1795_v4 = vunpack.i.l.bf16 %v1794_v2 }
 0x15e   :  { %1746 = vmatmul.msk.f32.vlgmr.msra.gmra.mxu1 %vm170_vm7, %v329_v0 }
 0x15f   :  { %1281 = vmatpush.msrb.mxu3 %v1795_v4 }
 0x161   :  { %1373 = vmatpush.msra.mxu3 %v1796_v3 }
 0x162   :  { %v364_v1 = vpop.permute.xlu1 %363 }
 0x163   :  { %1753 = vmatpush.xpose.msk.msrb.mxu1 %vm170_vm7, %v364_v1 }
 0x166   :  { %1754 = vmatmul.msk.f32.vlgmr.msrb.gmra.mxu1 %vm170_vm7, %v336_v52 }
 0x16a   :  { %v1799_v5 = vpop.permute.xlu1 %1798 }
 0x16b   :  { %v1801_v6 = vunpack.i.h.bf16 %v1799_v5  ;;  %v1800_v7 = vunpack.i.l.bf16 %v1799_v5 }
 0x16d   :  { %1235 = vmatpush.msra.mxu1 %v1800_v7 }
 0x16f   :  { %1327 = vmatpush.msrb.mxu1 %v1801_v6 }
 0x1af   :  { %v2224_v52 = vpop.xlane.xlu0 %823 }
 0x1b1   :  { %v478_v8 = vpop.f32.mrf.mxu2 }
 0x1b2   :  { %v2191_v9 = vmul.f32 0.17677669, %v478_v8 }
 0x1b3   :  { %v454_v10 = vpop.f32.mrf.mxu3 }
 0x1b4   :  { %v794_v11 = vmul.f32 0.17677669, %v454_v10  ;;  %v816_v12 = vsel %vm809_vm8, %v2191_v9, -inf }
 0x1b5   :  { %817 = vmax.xlane.f32.xlu0 %v816_v12 }
 0x1b6   :  { %v813_v13 = vsel %vm809_vm8, %v794_v11, -inf  ;;  %v2220_v50 = vpop.xlane.xlu2 %811 }
 0x1b7   :  { %814 = vmax.xlane.f32.xlu2 %v813_v13  ;;  %v2226_v58 = vpop.xlane.xlu1 %835 }
 0x1bb   :  { %v502_v15 = vpop.f32.mrf.mxu3 }
 0x1bc   :  { %v796_v43 = vmul.f32 0.17677669, %v502_v15 }
 0x1be   :  { %v819_v44 = vsel %vm809_vm8, %v796_v43, -inf }
 0x1bf   :  { %v2222_v51 = vpop.xlane.xlu2 %847 }
 0x1c3   :  { %v574_v16 = vpop.f32.mrf.mxu2  ;;  %v598_v17 = vpop.f32.mrf.mxu3 }
 0x1c4   :  { %v2198_v18 = vmul.f32 0.17677669, %v574_v16  ;;  %v800_v20 = vmul.f32 0.17677669, %v598_v17  ;;  %v550_v21 = vpop.f32.mrf.mxu1 }
 0x1c5   :  { %v798_v22 = vmul.f32 0.17677669, %v550_v21 }
 0x1c6   :  { %v831_v23 = vsel %vm809_vm8, %v800_v20, -inf  ;;  %v828_v24 = vsel %vm809_vm8, %v2198_v18, -inf }
 0x1c7   :  { %832 = vmax.xlane.f32.xlu0 %v831_v23  ;;  %829 = vmax.xlane.f32.xlu2 %v828_v24  ;;  %v825_v25 = vsel %vm809_vm8, %v798_v22, -inf }
 0x1c8   :  { %826 = vmax.xlane.f32.xlu1 %v825_v25 }
 0x1cb   :  { %v694_v26 = vpop.f32.mrf.mxu3 }
 0x1cc   :  { %v2204_v28 = vmul.f32 0.17677669, %v694_v26 }
 0x1ce   :  { %v843_v29 = vsel %vm809_vm8, %v2204_v28, -inf }
 0x1cf   :  { %844 = vmax.xlane.f32.xlu0 %v843_v29 }
 0x1d1   :  { %v670_v30 = vpop.f32.mrf.mxu2 }
 0x1d2   :  { %v803_v31 = vmul.f32 0.17677669, %v670_v30 }
 0x1d3   :  { %v790_v32 = vpop.f32.mrf.mxu3 }
 0x1d4   :  { %v2208_v33 = vmul.f32 0.17677669, %v790_v32  ;;  %v840_v34 = vsel %vm809_vm8, %v803_v31, -inf }
 0x1d5   :  { %841 = vmax.xlane.f32.xlu2 %v840_v34 }
 0x1d6   :  { %v855_v35 = vsel %vm809_vm8, %v2208_v33, -inf }
 0x1d7   :  { %856 = vmax.xlane.f32.xlu0 %v855_v35 }
 0x1d9   :  { %v766_v36 = vpop.f32.mrf.mxu2 }
 0x1da   :  { %v807_v37 = vmul.f32 0.17677669, %v766_v36 }
 0x1db   :  { %v646_v38 = vpop.f32.mrf.mxu1 }
 0x1dc   :  { %v802_v40 = vmul.f32 0.17677669, %v646_v38  ;;  %v852_v41 = vsel %vm809_vm8, %v807_v37, -inf }
 0x1dd   :  { %853 = vmax.xlane.f32.xlu2 %v852_v41 }
 0x1de   :  { %v837_v42 = vsel %vm809_vm8, %v802_v40, -inf }
 0x1df   :  { %838 = vmax.xlane.f32.xlu1 %v837_v42 }
 0x1e3   :  { %v742_v46 = vpop.f32.mrf.mxu1 }
 0x1e4   :  { %v2216_v48 = vmul.f32 0.17677669, %v742_v46 }
 0x1e6   :  { %v849_v49 = vsel %vm809_vm8, %v2216_v48, -inf }
 0x1e7   :  { %820 = vmax.xlane.f32.xlu1 %v819_v44 }
 0x1ef   :  { %850 = vmax.xlane.f32.xlu1 %v849_v49 }
 0x228   :  { %v818_v57 = vpop.xlane.xlu0 %817 }
 0x229   :  { %v860_v4 = vsub.f32 %v2191_v9, %v818_v57 }
 0x22a   :  { %v815_v53 = vpop.xlane.xlu2 %814 }
 0x22b   :  { %v859_v55 = vsub.f32 %v794_v11, %v815_v53  ;;  %v878_v6 = vmul.f32 1.442695, %v860_v4 }
 0x22d   :  { %v876_v56 = vmul.f32 1.442695, %v859_v55 }
 0x22f   :  { %1848 = vpow2.f32 %v876_v56 }
 0x235   :  { %v2228_v59 = vpop.eup %1848 }
 0x236   :  { %v909_v61 = vsel %vm809_vm8, %v2228_v59, 0.0 }
 0x237   :  { %910 = vadd.xlane.f32.xlu0 %v909_v61 }
 0x23a   :  { %v833_v62 = vpop.xlane.xlu0 %832  ;;  %v830_v5 = vpop.xlane.xlu2 %829 }
 0x23b   :  { %v865_v63 = vsub.f32 %v800_v20, %v833_v62  ;;  %v827_v0 = vpop.xlane.xlu1 %826  ;;  %v864_v36 = vsub.f32 %v2198_v18, %v830_v5 }
 0x23c   :  { %v863_v1 = vsub.f32 %v798_v22, %v827_v0  ;;  %v858_v0 = vsub.f32 %v2164_v45, %v2220_v50  ;;  %v862_v50 = vsub.f32 %v2157_v39, %v2224_v52 }
 0x23d   :  { %v888_v2 = vmul.f32 1.442695, %v865_v63 }
 0x23e   :  { %v884_v3 = vmul.f32 1.442695, %v863_v1  ;;  %v874_v1 = vmul.f32 1.442695, %v858_v0 }
 0x23f   :  { %1850 = vpow2.f32 %v888_v2  ;;  %v870_v2 = vsub.f32 %v2178_v54, %v2222_v51  ;;  %v866_v54 = vsub.f32 %v2169_v47, %v2226_v58  ;;  %v882_v51 = vmul.f32 1.442695, %v862_v50 }
 0x240   :  { %1852 = vpow2.f32 %v884_v3 }
 0x241   :  { %1854 = vpow2.f32 %v878_v6  ;;  %v898_v3 = vmul.f32 1.442695, %v870_v2 }
 0x242   :  { %v845_v29 = vpop.xlane.xlu0 %844 }
 0x245   :  { %v2233_v7 = vpop.eup %1850 }
 0x246   :  { %v927_v8 = vsel %vm809_vm8, %v2233_v7, 0.0  ;;  %v2237_v10 = vpop.eup %1852 }
 0x247   :  { %928 = vadd.xlane.f32.xlu0 %v927_v8  ;;  %v921_v11 = vsel %vm809_vm8, %v2237_v10, 0.0  ;;  %v2241_v15 = vpop.eup %1854 }
 0x248   :  { %v842_v12 = vpop.xlane.xlu2 %841  ;;  %922 = vadd.xlane.f32.xlu1 %v921_v11  ;;  %v912_v16 = vsel %vm809_vm8, %v2241_v15, 0.0  ;;  %v890_v11 = vmul.f32 1.442695, %v866_v54 }
 0x249   :  { %v868_v13 = vsub.f32 %v803_v31, %v842_v12 }
 0x24a   :  { %v857_v41 = vpop.xlane.xlu0 %856 }
 0x24b   :  { %v894_v9 = vmul.f32 1.442695, %v868_v13  ;;  %v873_v49 = vsub.f32 %v2208_v33, %v857_v41 }
 0x24d   :  { %1856 = vpow2.f32 %v894_v9  ;;  %v904_v56 = vmul.f32 1.442695, %v873_v49 }
 0x250   :  { %v854_v17 = vpop.xlane.xlu2 %853  ;;  %913 = vadd.xlane.f32.xlu1 %v912_v16 }
 0x251   :  { %v872_v20 = vsub.f32 %v807_v37, %v854_v17 }
 0x252   :  { %v839_v21 = vpop.xlane.xlu1 %838 }
 0x253   :  { %v2245_v22 = vpop.eup %1856  ;;  %v902_v23 = vmul.f32 1.442695, %v872_v20  ;;  %v867_v24 = vsub.f32 %v802_v40, %v839_v21  ;;  %v886_v40 = vmul.f32 1.442695, %v864_v36 }
 0x254   :  { %v936_v25 = vsel %vm809_vm8, %v2245_v22, 0.0 }
 0x255   :  { %1858 = vpow2.f32 %v902_v23  ;;  %v892_v26 = vmul.f32 1.442695, %v867_v24  ;;  %937 = vadd.xlane.f32.xlu0 %v936_v25 }
 0x257   :  { %1860 = vpow2.f32 %v892_v26 }
 0x25a   :  { %v821_v30 = vpop.xlane.xlu1 %820 }
 0x25b   :  { %v2249_v31 = vpop.eup %1858  ;;  %v861_v32 = vsub.f32 %v796_v43, %v821_v30  ;;  %v869_v43 = vsub.f32 %v2204_v28, %v845_v29 }
 0x25c   :  { %v948_v34 = vsel %vm809_vm8, %v2249_v31, 0.0 }
 0x25d   :  { %v2253_v35 = vpop.eup %1860  ;;  %v880_v37 = vmul.f32 1.442695, %v861_v32  ;;  %949 = vadd.xlane.f32.xlu0 %v948_v34  ;;  %v896_v55 = vmul.f32 1.442695, %v869_v43 }
 0x25e   :  { %v933_v38 = vsel %vm809_vm8, %v2253_v35, 0.0 }
 0x25f   :  { %1862 = vpow2.f32 %v880_v37  ;;  %934 = vadd.xlane.f32.xlu1 %v933_v38 }
 0x260   :  { %1864 = vpow2.f32 %v886_v40 }
 0x262   :  { %v851_v42 = vpop.xlane.xlu1 %850 }
 0x263   :  { %v871_v44 = vsub.f32 %v2216_v48, %v851_v42  ;;  %v2270_v48 = vadd.f32 %v2196_v14, %v163_v19 }
 0x265   :  { %v2260_v46 = vpop.eup %1862  ;;  %v900_v18 = vmul.f32 1.442695, %v871_v44  ;;  %v1802_v62 = vpack.i.bf16 %v2270_v48, %v2149_v27 }
 0x266   :  { %v915_v53 = vsel %vm809_vm8, %v2260_v46, 0.0  ;;  %v2265_v57 = vpop.eup %1864 }
 0x267   :  { %1866 = vpow2.f32 %v900_v18  ;;  %916 = vadd.xlane.f32.xlu2 %v915_v53  ;;  %v924_v61 = vsel %vm809_vm8, %v2265_v57, 0.0 }
 0x268   :  { %1868 = vpow2.f32 %v896_v55 }
 0x269   :  { %1870 = vpow2.f32 %v904_v56 }
 0x26a   :  { %1872 = vpow2.f32 %v874_v1 }
 0x26b   :  { %1874 = vpow2.f32 %v898_v3 }
 0x26d   :  { %v2272_v28 = vpop.eup %1866 }
 0x26e   :  { %v945_v33 = vsel %vm809_vm8, %v2272_v28, 0.0  ;;  %v2281_v60 = vpop.eup %1868 }
 0x26f   :  { %946 = vadd.xlane.f32.xlu1 %v945_v33  ;;  %925 = vadd.xlane.f32.xlu2 %v924_v61  ;;  %v2283_v19 = vpop.eup %1870  ;;  %v939_v14 = vsel %vm809_vm8, %v2281_v60, 0.0 }
 0x270   :  { %v951_v63 = vsel %vm809_vm8, %v2283_v19, 0.0  ;;  %v2295_v4 = vpop.eup %1872 }
 0x271   :  { %1803 = vrot.lane.b32.xlu0 %v1802_v62, %s2024_s2  ;;  %v906_v5 = vsel %vm809_vm8, %v2295_v4, 0.0  ;;  %v2299_v6 = vpop.eup %1874 }
 0x272   :  { %v942_v45 = vsel %vm809_vm8, %v2299_v6, 0.0 }
 0x277   :  { %940 = vadd.xlane.f32.xlu1 %v939_v14  ;;  %952 = vadd.xlane.f32.xlu2 %v951_v63 }
 0x28f   :  { %1808 = vrot.lane.b32.xlu2 %v1802_v62, %s2018_s30 }
 0x290   :  { %1813 = vrot.lane.b32.xlu1 %v1802_v62, %s2025_s3 }
 0x29b   :  { %907 = vadd.xlane.f32.xlu0 %v906_v5 }
 0x2a3   :  { %943 = vadd.xlane.f32.xlu0 %v942_v45 }
 0x2aa   :  { %v911_v8 = vpop.xlane.xlu0 %910 }
 0x2ab   :  { %1876 = vrcp.f32 %v911_v8  ;;  %v980_v17 = vand.u32 2147483648, %v911_v8  ;;  %v978_v39 = vand.u32 2147483647, %v911_v8  ;;  %vm974_vm10 = vweird.f32 %v911_v8 }
 0x2ac   :  { %1878 = vpow2.f32 %v882_v51 }
 0x2ad   :  { %1880 = vpow2.f32 %v890_v11  ;;  %v981_v58 = vor.u32 1.1754944e-38, %v980_v17  ;;  %vm979_vm12 = vcmp.eq.f32.partialorder %v978_v39, 8.507059e+37 }
 0x2b1   :  { %v1877_v12 = vpop.eup %1876 }
 0x2b2   :  { %v970_v13 = vmul.f32 %v1877_v12, %v911_v8  ;;  %v2307_v9 = vpop.eup %1878  ;;  %vm975_vm9 = vweird.f32 %v1877_v12 }
 0x2b3   :  { %v2309_v20 = vpop.eup %1880  ;;  %v918_v47 = vsel %vm809_vm8, %v2307_v9, 0.0  ;;  %vm976_vm11 = vmor %vm974_vm10, %vm975_vm9 }
 0x2b4   :  { %v971_v16 = vsub.f32 1.0, %v970_v13  ;;  %v930_v23 = vsel %vm809_vm8, %v2309_v20, 0.0 }
 0x2b6   :  { %v972_v21 = vmul.f32 %v1877_v12, %v971_v16 }
 0x2b8   :  { %v973_v52 = vadd.f32 %v1877_v12, %v972_v21  ;;  %919 = vadd.xlane.f32.xlu2 %v918_v47 }
 0x2ba   :  { %v977_v24 = vsel %vm976_vm11, %v1877_v12, %v973_v52  ;;  %931 = vadd.xlane.f32.xlu1 %v930_v23  ;;  %v2317_v41 = vpop.xlane.xlu0 %928 }
 0x2bb   :  { %v982_v25 = vsel %vm979_vm12, %v981_v58, %v977_v24  ;;  %v923_v26 = vpop.xlane.xlu1 %922  ;;  %vm1064_vm11 = vweird.f32 %v2317_v41 }
 0x2bc   :  { %v983_v29 = vmul.f32 %v2228_v59, %v982_v25  ;;  %1882 = vrcp.f32 %v923_v26  ;;  %v1040_v37 = vand.u32 2147483648, %v923_v26  ;;  %v1038_v40 = vand.u32 2147483647, %v923_v26 }
 0x2bd   :  { %vm1034_vm14 = vweird.f32 %v923_v26  ;;  %v1070_v25 = vand.u32 2147483648, %v2317_v41 }
 0x2be   :  { %1760 = vmatmul.msk.f32.vlgmr.msra.gmra.mxu1 %vm809_vm8, %v983_v29  ;;  %v1041_v43 = vor.u32 1.1754944e-38, %v1040_v37  ;;  %vm1039_vm0 = vcmp.eq.f32.partialorder %v1038_v40, 8.507059e+37 }
 0x2c2   :  { %v1883_v30 = vpop.eup %1882 }
 0x2c3   :  { %v1030_v32 = vmul.f32 %v1883_v30, %v923_v26  ;;  %v914_v34 = vpop.xlane.xlu1 %913  ;;  %vm1035_vm13 = vweird.f32 %v1883_v30 }
 0x2c4   :  { %1884 = vrcp.f32 %v914_v34  ;;  %vm1036_vm15 = vmor %vm1034_vm14, %vm1035_vm13  ;;  %v995_v56 = vand.u32 2147483648, %v914_v34  ;;  %v993_v61 = vand.u32 2147483647, %v914_v34  ;;  %vm989_vm2 = vweird.f32 %v914_v34 }
 0x2c5   :  { %v1031_v36 = vsub.f32 1.0, %v1030_v32  ;;  %1886 = vrcp.f32 %v2317_v41 }
 0x2c6   :  { %v996_v63 = vor.u32 1.1754944e-38, %v995_v56  ;;  %vm994_vm4 = vcmp.eq.f32.partialorder %v993_v61, 8.507059e+37 }
 0x2c7   :  { %v1032_v38 = vmul.f32 %v1883_v30, %v1031_v36 }
 0x2c8   :  { %v2321_v62 = vpop.xlane.xlu0 %937 }
 0x2c9   :  { %v1033_v42 = vadd.f32 %v1883_v30, %v1032_v38  ;;  %1888 = vrcp.f32 %v2321_v62 }
 0x2ca   :  { %v1885_v44 = vpop.eup %1884 }
 0x2cb   :  { %v1037_v59 = vsel %vm1036_vm15, %v1883_v30, %v1033_v42  ;;  %v985_v49 = vmul.f32 %v1885_v44, %v914_v34  ;;  %vm990_vm1 = vweird.f32 %v1885_v44 }
 0x2cc   :  { %v1042_v18 = vsel %vm1039_vm0, %v1041_v43, %v1037_v59  ;;  %vm991_vm3 = vmor %vm989_vm2, %vm990_vm1  ;;  %vm1109_vm1 = vweird.f32 %v2321_v62 }
 0x2cd   :  { %v986_v53 = vsub.f32 1.0, %v985_v49  ;;  %v1043_v55 = vmul.f32 %v2237_v10, %v1042_v18  ;;  %v2327_v10 = vpop.eup %1886  ;;  %v1068_v49 = vand.u32 2147483647, %v2317_v41  ;;  %v1071_v18 = vor.u32 1.1754944e-38, %v1070_v25 }
 0x2ce   :  { %v1060_v50 = vmul.f32 %v2327_v10, %v2317_v41  ;;  %vm1065_vm9 = vweird.f32 %v2327_v10 }
 0x2cf   :  { %v987_v33 = vmul.f32 %v1885_v44, %v986_v53  ;;  %1764 = vmatmul.msk.f32.vlgmr.msrb.gmra.mxu1 %vm809_vm8, %v1043_v55  ;;  %v2335_v54 = vpop.eup %1888  ;;  %vm2373_vm13 = vmor %vm1064_vm11, %vm1065_vm9  ;;  %vm1069_vm0 = vcmp.eq.f32.partialorder %v1068_v49, 8.507059e+37 }
 0x2d0   :  { %v2331_v45 = vpop.xlane.xlu0 %949  ;;  %v1061_v8 = vsub.f32 1.0, %v1060_v50  ;;  %vm1110_vm14 = vweird.f32 %v2335_v54 }
 0x2d1   :  { %v988_v14 = vadd.f32 %v1885_v44, %v987_v33  ;;  %vm2394_vm2 = vmor %vm1109_vm1, %vm1110_vm14 }
 0x2d2   :  { %v2329_v3 = vpop.xlane.xlu1 %934  ;;  %v1062_v21 = vmul.f32 %v2327_v10, %v1061_v8 }
 0x2d3   :  { %v992_v0 = vsel %vm991_vm3, %v1885_v44, %v988_v14 }
 0x2d4   :  { %v997_v1 = vsel %vm994_vm4, %v996_v63, %v992_v0  ;;  %v1063_v29 = vadd.f32 %v2327_v10, %v1062_v21 }
 0x2d5   :  { %v998_v2 = vmul.f32 %v2241_v15, %v997_v1  ;;  %v1105_v15 = vmul.f32 %v2335_v54, %v2321_v62 }
 0x2d6   :  { %v1067_v55 = vsel %vm2373_vm13, %v2327_v10, %v1063_v29 }
 0x2d7   :  { %1761 = vmatmul.msk.f32.vlgmr.msrb.gmra.mxu2 %vm809_vm8, %v998_v2  ;;  %v1106_v39 = vsub.f32 1.0, %v1105_v15  ;;  %v1113_v2 = vand.u32 2147483647, %v2321_v62 }
 0x2d9   :  { %v1107_v34 = vmul.f32 %v2335_v54, %v1106_v39  ;;  %vm1114_vm9 = vcmp.eq.f32.partialorder %v1113_v2, 8.507059e+37 }
 0x2da   :  { %v917_v5 = vpop.xlane.xlu2 %916 }
 0x2db   :  { %1890 = vrcp.f32 %v917_v5  ;;  %v1010_v52 = vand.u32 2147483648, %v917_v5  ;;  %v1008_v24 = vand.u32 2147483647, %v917_v5  ;;  %vm1004_vm6 = vweird.f32 %v917_v5 }
 0x2dc   :  { %1892 = vrcp.f32 %v2329_v3  ;;  %v1108_v33 = vadd.f32 %v2335_v54, %v1107_v34 }
 0x2dd   :  { %v1011_v38 = vor.u32 1.1754944e-38, %v1010_v52  ;;  %vm1009_vm12 = vcmp.eq.f32.partialorder %v1008_v24, 8.507059e+37 }
 0x2de   :  { %v1112_v15 = vsel %vm2394_vm2, %v2335_v54, %v1108_v33 }
 0x2e1   :  { %v1891_v51 = vpop.eup %1890 }
 0x2e2   :  { %v1000_v11 = vmul.f32 %v1891_v51, %v917_v5  ;;  %v2340_v12 = vpop.xlane.xlu1 %946  ;;  %v2342_v13 = vpop.xlane.xlu2 %925  ;;  %vm1005_vm5 = vweird.f32 %v1891_v51  ;;  %v1072_v5 = vsel %vm1069_vm0, %v1071_v18, %v1067_v55  ;;  %vm1094_vm0 = vweird.f32 %v2329_v3 }
 0x2e3   :  { %v2344_v16 = vpop.permute.xlu0 %1803  ;;  %1894 = vrcp.f32 %v2342_v13  ;;  %v2350_v23 = vpop.eup %1892  ;;  %vm2355_vm10 = vmor %vm1004_vm6, %vm1005_vm5  ;;  %v1055_v41 = vand.u32 2147483648, %v2342_v13  ;;  %v1053_v0 = vand.u32 2147483647, %v2342_v13  ;;  %vm1049_vm3 = vweird.f32 %v2342_v13 }
 0x2e4   :  { %v1001_v17 = vsub.f32 1.0, %v1000_v11  ;;  %1896 = vrcp.f32 %v2331_v45  ;;  %v1805_v58 = vunpack.i.l.bf16 %v2344_v16  ;;  %v1090_v36 = vmul.f32 %v2350_v23, %v2329_v3 }
 0x2e5   :  { %vm1054_vm5 = vcmp.eq.f32.partialorder %v1053_v0, 8.507059e+37  ;;  %v1806_v24 = vunpack.i.h.bf16 %v2344_v16 }
 0x2e6   :  { %v1002_v47 = vmul.f32 %v1891_v51, %v1001_v17  ;;  %1442 = vmatpush.msrb.mxu2 %v1805_v58  ;;  %v1091_v14 = vsub.f32 1.0, %v1090_v36  ;;  %v1056_v17 = vor.u32 1.1754944e-38, %v1055_v41  ;;  %v1098_v41 = vand.u32 2147483647, %v2329_v3 }
 0x2e8   :  { %v1003_v26 = vadd.f32 %v1891_v51, %v1002_v47 }
 0x2e9   :  { %v1895_v32 = vpop.eup %1894 }
 0x2ea   :  { %v1007_v37 = vsel %vm2355_vm10, %v1891_v51, %v1003_v26  ;;  %v2364_v40 = vpop.xlane.xlu1 %940  ;;  %v2366_v42 = vpop.xlane.xlu2 %952  ;;  %v1045_v43 = vmul.f32 %v1895_v32, %v2342_v13  ;;  %vm1050_vm15 = vweird.f32 %v1895_v32  ;;  %v1115_v51 = vand.u32 2147483648, %v2321_v62 }
 0x2eb   :  { %v2368_v44 = vpop.eup %1896  ;;  %1898 = vrcp.f32 %v2364_v40  ;;  %v1012_v53 = vsel %vm1009_vm12, %v1011_v38, %v1007_v37  ;;  %vm1051_vm4 = vmor %vm1049_vm3, %vm1050_vm15  ;;  %v1092_v62 = vmul.f32 %v2350_v23, %v1091_v14  ;;  %v1128_v29 = vand.u32 2147483647, %v2364_v40 }
 0x2ec   :  { %1900 = vrcp.f32 %v2340_v12  ;;  %v1046_v56 = vsub.f32 1.0, %v1045_v43  ;;  %v1165_v61 = vmul.f32 %v2368_v44, %v2331_v45  ;;  %v1013_v1 = vmul.f32 %v2260_v46, %v1012_v53 }
 0x2ed   :  { %1902 = vrcp.f32 %v2366_v42  ;;  %v1130_v30 = vand.u32 2147483648, %v2364_v40  ;;  %v1116_v38 = vor.u32 1.1754944e-38, %v1115_v51  ;;  %v1073_v43 = vmul.f32 %v2233_v7, %v1072_v5 }
 0x2ee   :  { %v1047_v63 = vmul.f32 %v1895_v32, %v1046_v56  ;;  %1762 = vmatmul.msk.f32.vlgmr.msrb.gmra.mxu3 %vm809_vm8, %v1013_v1  ;;  %v1166_v11 = vsub.f32 1.0, %v1165_v61  ;;  %vm1169_vm10 = vweird.f32 %v2331_v45  ;;  %vm1124_vm11 = vweird.f32 %v2364_v40 }
 0x2ef   :  { %v1117_v49 = vsel %vm1114_vm9, %v1116_v38, %v1112_v15  ;;  %vm1095_vm12 = vweird.f32 %v2350_v23  ;;  %v1093_v53 = vadd.f32 %v2350_v23, %v1092_v62  ;;  %vm1129_vm14 = vcmp.eq.f32.partialorder %v1128_v29, 8.507059e+37 }
 0x2f0   :  { %v1048_v8 = vadd.f32 %v1895_v32, %v1047_v63  ;;  %v1167_v16 = vmul.f32 %v2368_v44, %v1166_v11  ;;  %vm1170_vm15 = vweird.f32 %v2368_v44  ;;  %v1173_v61 = vand.u32 2147483647, %v2331_v45  ;;  %vm2437_vm1 = vmor %vm1094_vm0, %vm1095_vm12 }
 0x2f1   :  { %v1899_v10 = vpop.eup %1898  ;;  %v1175_v14 = vand.u32 2147483648, %v2331_v45  ;;  %v1118_v1 = vmul.f32 %v2245_v22, %v1117_v49  ;;  %vm2447_vm3 = vmor %vm1169_vm10, %vm1170_vm15  ;;  %v1190_v50 = vand.u32 2147483648, %v2366_v42  ;;  %vm1154_vm12 = vweird.f32 %v2340_v12 }
 0x2f2   :  { %v2401_v46 = vpop.eup %1900  ;;  %v1120_v21 = vmul.f32 %v1899_v10, %v2364_v40  ;;  %v1809_v39 = vpop.permute.xlu2 %1808  ;;  %v1052_v13 = vsel %vm1051_vm4, %v1895_v32, %v1048_v8  ;;  %vm1125_vm6 = vweird.f32 %v1899_v10  ;;  %v1168_v56 = vadd.f32 %v2368_v44, %v1167_v16 }
 0x2f3   :  { %v2408_v47 = vpop.eup %1902  ;;  %v1810_v52 = vunpack.i.l.bf16 %v1809_v39  ;;  %v1057_v58 = vsel %vm1054_vm5, %v1056_v17, %v1052_v13  ;;  %v1150_v26 = vmul.f32 %v2401_v46, %v2340_v12  ;;  %v1811_v37 = vunpack.i.h.bf16 %v1809_v39  ;;  %vm1126_vm13 = vmor %vm1124_vm11, %vm1125_vm6 }
 0x2f4   :  { %v1121_v25 = vsub.f32 1.0, %v1120_v21  ;;  %v1180_v54 = vmul.f32 %v2408_v47, %v2366_v42  ;;  %v1058_v34 = vmul.f32 %v2265_v57, %v1057_v58  ;;  %v1131_v57 = vor.u32 1.1754944e-38, %v1130_v30 }
 0x2f5   :  { %1465 = vmatpush.msrb.mxu3 %v1810_v52  ;;  %v1151_v55 = vsub.f32 1.0, %v1150_v26  ;;  %v1100_v40 = vand.u32 2147483648, %v2329_v3  ;;  %vm1185_vm2 = vweird.f32 %v2408_v47  ;;  %v1097_v3 = vsel %vm2437_vm1, %v2350_v23, %v1093_v53 }
 0x2f6   :  { %v1122_v32 = vmul.f32 %v1899_v10, %v1121_v25  ;;  %v1181_v36 = vsub.f32 1.0, %v1180_v54  ;;  %1765 = vmatmul.msk.f32.vlgmr.msra.gmra.mxu2 %vm809_vm8, %v1058_v34  ;;  %1766 = vmatmul.msk.f32.vlgmr.msra.gmra.mxu3 %vm809_vm8, %v1073_v43  ;;  %v1172_v22 = vsel %vm2447_vm3, %v2368_v44, %v1168_v56  ;;  %vm1184_vm4 = vweird.f32 %v2366_v42 }
 0x2f7   :  { %1534 = vmatpush.msra.mxu2 %v1806_v24  ;;  %1557 = vmatpush.msra.mxu3 %v1811_v37  ;;  %v1152_v5 = vmul.f32 %v2401_v46, %v1151_v55  ;;  %v1101_v51 = vor.u32 1.1754944e-38, %v1100_v40  ;;  %v1176_v45 = vor.u32 1.1754944e-38, %v1175_v14  ;;  %vm1099_vm5 = vcmp.eq.f32.partialorder %v1098_v41, 8.507059e+37  ;;  %vm2462_vm6 = vmor %vm1184_vm4, %vm1185_vm2 }
 0x2f8   :  { %v1123_v59 = vadd.f32 %v1899_v10, %v1122_v32  ;;  %v1182_v18 = vmul.f32 %v2408_v47, %v1181_v36  ;;  %vm1174_vm9 = vcmp.eq.f32.partialorder %v1173_v61, 8.507059e+37  ;;  %vm1155_vm10 = vweird.f32 %v2401_v46 }
 0x2f9   :  { %v1102_v23 = vsel %vm1099_vm5, %v1101_v51, %v1097_v3  ;;  %v1177_v44 = vsel %vm1174_vm9, %v1176_v45, %v1172_v22  ;;  %v1153_v11 = vadd.f32 %v2401_v46, %v1152_v5  ;;  %v1160_v21 = vand.u32 2147483648, %v2340_v12 }
 0x2fa   :  { %v1127_v7 = vsel %vm1126_vm13, %v1899_v10, %v1123_v59  ;;  %v1183_v0 = vadd.f32 %v2408_v47, %v1182_v18  ;;  %v1158_v13 = vand.u32 2147483647, %v2340_v12  ;;  %vm1156_vm13 = vmor %vm1154_vm12, %vm1155_vm10  ;;  %v1178_v58 = vmul.f32 %v2249_v31, %v1177_v44 }
 0x2fb   :  { %v1132_v33 = vsel %vm1129_vm14, %v1131_v57, %v1127_v7  ;;  %v1157_v24 = vsel %vm1156_vm13, %v2401_v46, %v1153_v11  ;;  %v1161_v25 = vor.u32 1.1754944e-38, %v1160_v21 }
 0x2fc   :  { %v1133_v2 = vmul.f32 %v2281_v60, %v1132_v33  ;;  %v1188_v60 = vand.u32 2147483647, %v2366_v42  ;;  %v1187_v15 = vsel %vm2462_vm6, %v2408_v47, %v1183_v0  ;;  %v1191_v42 = vor.u32 1.1754944e-38, %v1190_v50 }
 0x2fd   :  { %v1103_v47 = vmul.f32 %v2253_v35, %v1102_v23  ;;  %vm1159_vm14 = vcmp.eq.f32.partialorder %v1158_v13, 8.507059e+37 }
 0x2fe   :  { %1769 = vmatmul.msk.f32.vlgmr.msrb.gmra.mxu2 %vm809_vm8, %v1118_v1  ;;  %1770 = vmatmul.msk.f32.vlgmr.msrb.gmra.mxu3 %vm809_vm8, %v1133_v2  ;;  %vm1189_vm11 = vcmp.eq.f32.partialorder %v1188_v60, 8.507059e+37  ;;  %v1162_v26 = vsel %vm1159_vm14, %v1161_v25, %v1157_v24 }
 0x2ff   :  { %v1192_v52 = vsel %vm1189_vm11, %v1191_v42, %v1187_v15  ;;  %v1163_v35 = vmul.f32 %v2272_v28, %v1162_v26 }
 0x300   :  { %v1193_v54 = vmul.f32 %v2283_v19, %v1192_v52 }
 0x302   :  { %v1814_v17 = vpop.permute.xlu1 %1813 }
 0x303   :  { %v1816_v39 = vunpack.i.h.bf16 %v1814_v17  ;;  %v1815_v62 = vunpack.i.l.bf16 %v1814_v17 }
 0x305   :  { %1419 = vmatpush.msra.mxu1 %v1815_v62 }
 0x306   :  { %1768 = vmatmul.msk.f32.vlgmr.msra.gmra.mxu1 %vm809_vm8, %v1103_v47  ;;  %1773 = vmatmul.msk.f32.vlgmr.msra.gmra.mxu2 %vm809_vm8, %v1178_v58 }
 0x307   :  { %1511 = vmatpush.msrb.mxu1 %v1816_v39  ;;  %1774 = vmatmul.msk.f32.vlgmr.msra.gmra.mxu3 %vm809_vm8, %v1193_v54 }
 0x30e   :  { %1772 = vmatmul.msk.f32.vlgmr.msrb.gmra.mxu1 %vm809_vm8, %v1163_v35  ;;  %v908_v12 = vpop.xlane.xlu0 %907 }
 0x30f   :  { %1904 = vrcp.f32 %v908_v12  ;;  %v965_v30 = vand.u32 2147483648, %v908_v12  ;;  %v963_v32 = vand.u32 2147483647, %v908_v12  ;;  %vm959_vm0 = vweird.f32 %v908_v12 }
 0x311   :  { %v966_v19 = vor.u32 1.1754944e-38, %v965_v30  ;;  %vm964_vm2 = vcmp.eq.f32.partialorder %v963_v32, 8.507059e+37  ;;  %v1638_v30 = vld [vmem:[#allocation7 + $0x70] sm:$0xff]  ;;  %v1637_v32 = vld [vmem:[#allocation7 + $0x68] sm:$0xff] }
 0x315   :  { %v1905_v31 = vpop.eup %1904 }
 0x316   :  { %v955_v46 = vmul.f32 %v1905_v31, %v908_v12  ;;  %vm960_vm15 = vweird.f32 %v1905_v31  ;;  %v944_v16 = vpop.xlane.xlu0 %943 }
 0x317   :  { %vm961_vm1 = vmor %vm959_vm0, %vm960_vm15  ;;  %v1145_v8 = vand.u32 2147483648, %v944_v16  ;;  %vm1139_vm14 = vweird.f32 %v944_v16  ;;  %v1143_v23 = vand.u32 2147483647, %v944_v16 }
 0x318   :  { %v956_v29 = vsub.f32 1.0, %v955_v46  ;;  %v1639_v46 = vld [vmem:[#allocation7 + $0x78] sm:$0xff] }
 0x319   :  { %v1146_v11 = vor.u32 1.1754944e-38, %v1145_v8  ;;  %vm1144_vm0 = vcmp.eq.f32.partialorder %v1143_v23, 8.507059e+37 }
 0x31a   :  { %v957_v34 = vmul.f32 %v1905_v31, %v956_v29  ;;  %v1655_v29 = vld [vmem:[#allocation7 + $0xf8] sm:$0xff] }
 0x31b   :  { %1683 = vmatpush.msra.mxu1 %v1655_v29 }
 0x31c   :  { %v958_v36 = vadd.f32 %v1905_v31, %v957_v34  ;;  %v1654_v34 = vld [vmem:[#allocation7 + $0xf0] sm:$0xff] }
 0x31d   :  { %1684 = vmatpush.msra.mxu1 %v1654_v34 }
 0x31e   :  { %v962_v37 = vsel %vm961_vm1, %v1905_v31, %v958_v36  ;;  %v1653_v36 = vld [vmem:[#allocation7 + $0xe8] sm:$0xff]  ;;  %vm1589_vm1 = vcmask 785408  }
 0x31f   :  { %v967_v38 = vsel %vm964_vm2, %v966_v19, %v962_v37  ;;  %v1636_v19 = vld [vmem:[#allocation7 + $0x60] sm:$0xff]  ;;  %1685 = vmatpush.msra.mxu1 %v1653_v36 }
 0x320   :  { %v968_v28 = vmul.f32 %v2295_v4, %v967_v38  ;;  %v1652_v37 = vld [vmem:[#allocation7 + $0xe0] sm:$0xff]  ;;  %v1635_v38 = vld [vmem:[#allocation7 + $0x58] sm:$0xff] }
 0x321   :  { %1686 = vmatpush.msra.mxu1 %v1652_v37 }
 0x322   :  { %1759 = vmatmul.msk.f32.vlgmr.msra.gmra.mxu0 %vm809_vm8, %v968_v28  ;;  %v1651_v28 = vld [vmem:[#allocation7 + $0xd8] sm:$0xff] }
 0x323   :  { %1396 = vmatpush.msra.mxu0 %v2149_v27  ;;  %1687 = vmatpush.msra.mxu1 %v1651_v28 }
 0x32b   :  { %v920_v43 = vpop.xlane.xlu2 %919 }
 0x32c   :  { %1906 = vrcp.f32 %v920_v43  ;;  %v1025_v40 = vand.u32 2147483648, %v920_v43  ;;  %v1023_v4 = vand.u32 2147483647, %v920_v43  ;;  %vm1019_vm4 = vweird.f32 %v920_v43 }
 0x32d   :  { %1908 = vrcp.f32 %v944_v16  ;;  %v932_v59 = vpop.xlane.xlu1 %931 }
 0x32e   :  { %1910 = vrcp.f32 %v932_v59  ;;  %v1026_v63 = vor.u32 1.1754944e-38, %v1025_v40  ;;  %vm1024_vm6 = vcmp.eq.f32.partialorder %v1023_v4, 8.507059e+37  ;;  %v1085_v10 = vand.u32 2147483648, %v932_v59  ;;  %v1629_v40 = vld [vmem:[#allocation7 + $0x28] sm:$0xff]  ;;  %v1628_v4 = vld [vmem:[#allocation7 + $0x20] sm:$0xff] }
 0x32f   :  { %vm1079_vm10 = vweird.f32 %v932_v59  ;;  %v1083_v3 = vand.u32 2147483647, %v932_v59 }
 0x330   :  { %v1086_v51 = vor.u32 1.1754944e-38, %v1085_v10  ;;  %v1640_v10 = vld [vmem:[#allocation7 + $0x80] sm:$0xff] }
 0x331   :  { %vm1084_vm12 = vcmp.eq.f32.partialorder %v1083_v3, 8.507059e+37 }
 0x332   :  { %v1907_v49 = vpop.eup %1906 }
 0x333   :  { %v1909_v57 = vpop.eup %1908  ;;  %v1015_v18 = vmul.f32 %v1907_v49, %v920_v43  ;;  %vm1020_vm3 = vweird.f32 %v1907_v49  ;;  %v1650_v43 = vld [vmem:[#allocation7 + $0xd0] sm:$0xff] }
 0x334   :  { %v1911_v53 = vpop.eup %1910  ;;  %v1135_v56 = vmul.f32 %v1909_v57, %v944_v16  ;;  %vm1021_vm5 = vmor %vm1019_vm4, %vm1020_vm3  ;;  %vm1140_vm13 = vweird.f32 %v1909_v57  ;;  %v1634_v16 = vld [vmem:[#allocation7 + $0x50] sm:$0xff]  ;;  %1688 = vmatpush.msra.mxu1 %v1650_v43 }
 0x335   :  { %v1016_v55 = vsub.f32 1.0, %v1015_v18  ;;  %v1075_v7 = vmul.f32 %v1911_v53, %v932_v59  ;;  %vm1080_vm9 = vweird.f32 %v1911_v53  ;;  %vm1141_vm15 = vmor %vm1139_vm14, %vm1140_vm13  ;;  %v1633_v59 = vld [vmem:[#allocation7 + $0x48] sm:$0xff]  ;;  %v1648_v18 = vld [vmem:[#allocation7 + $0xc0] sm:$0xff] }
 0x336   :  { %v1136_v41 = vsub.f32 1.0, %v1135_v56  ;;  %vm1081_vm11 = vmor %vm1079_vm10, %vm1080_vm9  ;;  %v1646_v56 = vld [vmem:[#allocation7 + $0xb0] sm:$0xff] }
 0x337   :  { %v1017_v33 = vmul.f32 %v1907_v49, %v1016_v55  ;;  %v1076_v61 = vsub.f32 1.0, %v1075_v7  ;;  %v1647_v55 = vld [vmem:[#allocation7 + $0xb8] sm:$0xff]  ;;  %v1630_v7 = vld [vmem:[#allocation7 + $0x30] sm:$0xff] }
 0x338   :  { %v1137_v50 = vmul.f32 %v1909_v57, %v1136_v41  ;;  %v1642_v41 = vld [vmem:[#allocation7 + $0x90] sm:$0xff] }
 0x339   :  { %v1018_v14 = vadd.f32 %v1907_v49, %v1017_v33  ;;  %v1077_v27 = vmul.f32 %v1911_v53, %v1076_v61  ;;  %v1645_v33 = vld [vmem:[#allocation7 + $0xa8] sm:$0xff]  ;;  %v1644_v61 = vld [vmem:[#allocation7 + $0xa0] sm:$0xff] }
 0x33a   :  { %v1138_v45 = vadd.f32 %v1909_v57, %v1137_v50 }
 0x33b   :  { %v1022_v0 = vsel %vm1021_vm5, %v1907_v49, %v1018_v14  ;;  %v1078_v1 = vadd.f32 %v1911_v53, %v1077_v27  ;;  %v1237_v15 = vpop.f32.mrf.mxu1  ;;  %v1649_v49 = vld [vmem:[#allocation7 + $0xc8] sm:$0xff]  ;;  %v1627_v14 = vld [vmem:[#allocation7 + $0x18] sm:$0xff] }
 0x33c   :  { %v1027_v2 = vsel %vm1024_vm6, %v1026_v63, %v1022_v0  ;;  %1689 = vmatpush.msra.mxu1 %v1649_v49  ;;  %v1643_v27 = vld [vmem:[#allocation7 + $0x98] sm:$0xff]  ;;  %v1626_v63 = vld [vmem:[#allocation7 + $0x10] sm:$0xff]  ;;  %v1625_v0 = vld [vmem:[#allocation7 + $0x8] sm:$0xff] }
 0x33d   :  { %v1028_v5 = vmul.f32 %v2307_v9, %v1027_v2  ;;  %v1082_v22 = vsel %vm1081_vm11, %v1911_v53, %v1078_v1  ;;  %v1142_v9 = vsel %vm1141_vm15, %v1909_v57, %v1138_v45  ;;  %v1632_v57 = vld [vmem:[#allocation7 + $0x40] sm:$0xff]  ;;  %v1631_v53 = vld [vmem:[#allocation7 + $0x38] sm:$0xff]  ;;  %v1641_v1 = vld [vmem:[#allocation7 + $0x88] sm:$0xff] }
 0x33e   :  { %v1087_v60 = vsel %vm1084_vm12, %v1086_v51, %v1082_v22  ;;  %v1147_v42 = vsel %vm1144_vm0, %v1146_v11, %v1142_v9  ;;  %1690 = vmatpush.msra.mxu1 %v1648_v18  ;;  %v1624_v2 = vld [vmem:[#allocation7] sm:$0xff] }
 0x33f   :  { %1763 = vmatmul.msk.f32.vlgmr.msrb.gmra.mxu0 %vm809_vm8, %v1028_v5  ;;  %v1088_v44 = vmul.f32 %v2309_v20, %v1087_v60 }
 0x340   :  { %1488 = vmatpush.msrb.mxu0 %v2270_v48  ;;  %v1148_v48 = vmul.f32 %v2299_v6, %v1147_v42  ;;  %1691 = vmatpush.msra.mxu1 %v1647_v55 }
 0x342   :  { %1692 = vmatpush.msra.mxu1 %v1646_v56 }
 0x344   :  { %1693 = vmatpush.msra.mxu1 %v1645_v33 }
 0x346   :  { %1694 = vmatpush.msra.mxu1 %v1644_v61 }
 0x347   :  { %1767 = vmatmul.msk.f32.vlgmr.msra.gmra.mxu0 %vm809_vm8, %v1088_v44 }
 0x348   :  { %1660 = vmatpush.msra.mxu0 %v1639_v46  ;;  %1695 = vmatpush.msra.mxu1 %v1643_v27 }
 0x34a   :  { %1661 = vmatpush.msra.mxu0 %v1638_v30  ;;  %1696 = vmatpush.msra.mxu1 %v1642_v41  ;;  %v1847_v30 = vld [vmem:[%s2525_s4] ss:$0 sm:$0xff] }
 0x34c   :  { %v1329_v17 = vpop.f32.mrf.mxu1  ;;  %1662 = vmatpush.msra.mxu0 %v1637_v32  ;;  %1697 = vmatpush.msra.mxu1 %v1641_v1 }
 0x34d   :  { %v1817_v21 = vpack.i.bf16 %v1329_v17, %v1237_v15 }
 0x34e   :  { %1663 = vmatpush.msra.mxu0 %v1636_v19  ;;  %1698 = vmatpush.msra.mxu1 %v1640_v10 }
 0x34f   :  { %1771 = vmatmul.msk.f32.vlgmr.msrb.gmra.mxu0 %vm809_vm8, %v1148_v48  ;;  %1818 = vrot.lane.b32.xlu2 %v1817_v21, %s2018_s30  ;;  %vm1587_vm8 = vcmask 523264  }
 0x350   :  { %1664 = vmatpush.msra.mxu0 %v1635_v38 }
 0x352   :  { %1665 = vmatpush.msra.mxu0 %v1634_v16 }
 0x354   :  { %1666 = vmatpush.msra.mxu0 %v1633_v59 }
 0x356   :  { %1667 = vmatpush.msra.mxu0 %v1632_v57 }
 0x358   :  { %1668 = vmatpush.msra.mxu0 %v1631_v53 }
 0x35a   :  { %v1260_v39 = vpop.f32.mrf.mxu2  ;;  %1669 = vmatpush.msra.mxu0 %v1630_v7 }
 0x35c   :  { %1670 = vmatpush.msra.mxu0 %v1629_v40 }
 0x35e   :  { %1671 = vmatpush.msra.mxu0 %v1628_v4 }
 0x360   :  { %1672 = vmatpush.msra.mxu0 %v1627_v14 }
 0x362   :  { %1673 = vmatpush.msra.mxu0 %v1626_v63 }
 0x364   :  { %1674 = vmatpush.msra.mxu0 %v1625_v0 }
 0x366   :  { %1675 = vmatpush.msra.mxu0 %v1624_v2 }
 0x371   :  { %v1283_v62 = vpop.f32.mrf.mxu3 }
 0x379   :  { %v1352_v13 = vpop.f32.mrf.mxu2  ;;  %v1375_v20 = vpop.f32.mrf.mxu3 }
 0x37a   :  { %v1822_v52 = vpack.i.bf16 %v1352_v13, %v1260_v39  ;;  %v1827_v47 = vpack.i.bf16 %v1375_v20, %v1283_v62 }
 0x37c   :  { %1823 = vrot.lane.b32.xlu0 %v1822_v52, %s2024_s2  ;;  %1828 = vrot.lane.b32.xlu1 %v1827_v47, %s2025_s3 }
 0x381   :  { %v1444_v58 = vpop.f32.mrf.mxu2  ;;  %v1467_v25 = vpop.f32.mrf.mxu3 }
 0x383   :  { %v1421_v24 = vpop.f32.mrf.mxu1 }
 0x389   :  { %v1536_v54 = vpop.f32.mrf.mxu2 }
 0x38a   :  { %v1837_v6 = vpack.i.bf16 %v1536_v54, %v1444_v58  ;;  %v1559_v12 = vpop.f32.mrf.mxu3 }
 0x38b   :  { %v1513_v26 = vpop.f32.mrf.mxu1  ;;  %v1842_v31 = vpack.i.bf16 %v1559_v12, %v1467_v25 }
 0x38c   :  { %v1832_v35 = vpack.i.bf16 %v1513_v26, %v1421_v24  ;;  %1838 = vrot.lane.b32.xlu2 %v1837_v6, %s2024_s2 }
 0x38e   :  { %1833 = vrot.lane.b32.xlu0 %v1832_v35, %s2018_s30 }
 0x396   :  { %1843 = vrot.lane.b32.xlu0 %v1842_v31, %s2025_s3 }
 0x39f   :  { %v1214_v3 = vpop.f32.mrf.mxu0 }
 0x3a9   :  { %v1819_v5 = vpop.permute.xlu2 %1818 }
 0x3aa   :  { %v1820_v50 = vunpack.i.l.bf16 %v1819_v5  ;;  %v1821_v51 = vunpack.i.h.bf16 %v1819_v5 }
 0x3ac   :  { %v1586_v23 = vsel %vm170_vm7, %v1214_v3, %v1820_v50 }
 0x3bc   :  { %v1306_v22 = vpop.f32.mrf.mxu0 }
 0x3bd   :  { %v1591_v15 = vsel %vm170_vm7, %v1306_v22, %v1821_v51 }
 0x3c4   :  { %v1398_v39 = vpop.f32.mrf.mxu0 }
 0x3cc   :  { %v1490_v47 = vpop.f32.mrf.mxu0 }
 0x3e6   :  { %v1839_v20 = vpop.permute.xlu2 %1838 }
 0x3e7   :  { %v1841_v25 = vunpack.i.h.bf16 %v1839_v20  ;;  %v1840_v54 = vunpack.i.l.bf16 %v1839_v20 }
 0x3ee   :  { %v1824_v60 = vpop.permute.xlu0 %1823  ;;  %v1829_v44 = vpop.permute.xlu1 %1828 }
 0x3ef   :  { %v1826_v45 = vunpack.i.h.bf16 %v1824_v60  ;;  %v1825_v8 = vunpack.i.l.bf16 %v1824_v60  ;;  %v1831_v9 = vunpack.i.h.bf16 %v1829_v44  ;;  %v1830_v11 = vunpack.i.l.bf16 %v1829_v44 }
 0x3f1   :  { %v1588_v42 = vsel %vm1587_vm8, %v1586_v23, %v1825_v8  ;;  %v1592_v17 = vsel %vm1587_vm8, %v1591_v15, %v1826_v45 }
 0x3f2   :  { %v1590_v48 = vsel %vm1589_vm1, %v1588_v42, %v1830_v11  ;;  %v1593_v21 = vsel %vm1589_vm1, %v1592_v17, %v1831_v9 }
 0x3f3   :  { %1676 = vmatmul.f32.vlgmr.msra.gmra.mxu0 %v1590_v48  ;;  %1699 = vmatmul.f32.vlgmr.msra.gmra.mxu1 %v1593_v21 }
 0x400   :  { %v1834_v62 = vpop.permute.xlu0 %1833 }
 0x401   :  { %v1836_v13 = vunpack.i.h.bf16 %v1834_v62  ;;  %v1835_v52 = vunpack.i.l.bf16 %v1834_v62 }
 0x403   :  { %v1618_v58 = vsel %vm170_vm7, %v1398_v39, %v1835_v52  ;;  %v1621_v24 = vsel %vm170_vm7, %v1490_v47, %v1836_v13 }
 0x404   :  { %v1619_v12 = vsel %vm1587_vm8, %v1618_v58, %v1840_v54  ;;  %v1622_v31 = vsel %vm1587_vm8, %v1621_v24, %v1841_v25 }
 0x408   :  { %v1844_v6 = vpop.permute.xlu0 %1843 }
 0x409   :  { %v1846_v26 = vunpack.i.h.bf16 %v1844_v6  ;;  %v1845_v35 = vunpack.i.l.bf16 %v1844_v6 }
 0x40b   :  { %v1620_v46 = vsel %vm1589_vm1, %v1619_v12, %v1845_v35  ;;  %v1623_v29 = vsel %vm1589_vm1, %v1622_v31, %v1846_v26 }
 0x40c   :  { %1679 = vmatmul.f32.gmra.mxu0 %v1620_v46  ;;  %1702 = vmatmul.f32.gmra.mxu1 %v1623_v29 }
 0x470   :  { %v1677_v34 = vpop.f32.mrf.mxu0  ;;  %v1700_v36 = vpop.f32.mrf.mxu1 }
 0x471   :  { %v1678_v32 = vadd.f32 %v1847_v30, %v1677_v34 }
 0x473   :  { %v1701_v19 = vadd.f32 %v1700_v36, %v1678_v32 }
 0x475   :  { %1706 = vst [vmem:[%s2526_s5] sm:$0xff] %v1701_v19 }
 0x489   :  { %v1680_v37 = vpop.f32.mrf.mxu0  ;;  %v1703_v28 = vpop.f32.mrf.mxu1 }
 0x48a   :  { %v1681_v38 = vadd.f32 %v1847_v30, %v1680_v37 }
 0x48c   :  { %v1704_v16 = vadd.f32 %v1703_v28, %v1681_v38 }
 0x48e   :  { %1707 = vst [vmem:[%s2526_s5 + $0x8] sm:$0xff] %v1704_v16 }
 0x48f   :  { %1712 = vsyncpa [#allocation3], 1 }
 0x490   :  { %1713 = vsyncpa [#allocation5], 1 }
 0x491   :  { %1714 = vsyncpa [#allocation8], 1 }

</bundles_post_ra>
